<compile_context>
chip_gen: v6e
topology: v6e:2x2x1
jax: 0.10.0
libtpu: 0.0.40
codegen_flags: <defaults>
</compile_context>

<pallas_src>
import functools

import jax
import jax.numpy as jnp
import numpy as np
from jax.experimental import pallas as pl
from jax.experimental.pallas import tpu as pltpu


def hamilton_weight(r_w, i_w, j_w, k_w):
    """Assemble the real-valued quaternion (Hamilton product) conv weight.

    r/i/j/k weights: (O4, I4, kH, kW)  ->  (4*O4, 4*I4, kH, kW), f32.
    Matches quaternion_conv's torch.cat construction exactly.
    """
    rw, iw, jw, kw = (w.astype(jnp.float32) for w in (r_w, i_w, j_w, k_w))
    row_r = jnp.concatenate([rw, -iw, -jw, -kw], axis=1)
    row_i = jnp.concatenate([iw, rw, -kw, jw], axis=1)
    row_j = jnp.concatenate([jw, kw, rw, -iw], axis=1)
    row_k = jnp.concatenate([kw, -jw, iw, rw], axis=1)
    return jnp.concatenate([row_r, row_i, row_j, row_k], axis=0)


def _qconv2d_kernel(x_ref, w_ref, b_ref, o_ref, *, kH, kW, Ho, Wo, Cin,
                    stride, dilation):
    # x_ref: (1, Hp, Wp, Cin)        padded NHWC image for this batch element
    # w_ref: (Cout, kH*kW*Cin)       Hamilton weight, K ordered as (kh, kw, cin)
    # b_ref: (Cout, 1)               f32 bias (zeros when the module has bias=False)
    # o_ref: (1, Cout, Ho*Wo)        NCHW output with flattened spatial (lane-dense)
    x = x_ref[0]                                          # native dtype, no f32 upcast

    # --- im2col: build the (Ho*Wo, kH*kW*Cin) slab with cheap static slices ------
    patches = []
    for kh in range(kH):                                  # static, tiny (kH*kW taps)
        for kw in range(kW):
            h0 = kh * dilation
            w0 = kw * dilation
            if stride == 1:
                patch = x[h0:h0 + Ho, w0:w0 + Wo, :]
            else:
                patch = x[h0:h0 + (Ho - 1) * stride + 1:stride,
                          w0:w0 + (Wo - 1) * stride + 1:stride, :]
            patches.append(patch.reshape(Ho * Wo, Cin))
    slab = jnp.concatenate(patches, axis=-1)              # (Ho*Wo, kH*kW*Cin)

    # --- single MXU matmul, K = kH*kW*Cin, result (Cout, Ho*Wo) is lane-dense -----
    acc = jax.lax.dot_general(
        w_ref[...], slab,
        dimension_numbers=(((1,), (1,)), ((), ())),       # W @ slab^T
        preferred_element_type=jnp.float32)                # (Cout, Ho*Wo) f32

    acc += b_ref[...]                                      # (Cout, 1) lane-broadcast
    o_ref[0] = acc.astype(o_ref.dtype)                     # dense, unmasked store


def quaternion_conv2d(x, r_w, i_w, j_w, k_w, bias=None, *,
                      stride=1, padding=0, dilation=1, groups=1):
    """_QConv.forward (rotation=False, operation='convolution2d') as a Pallas kernel."""
    if groups != 1:
        # TODO(synk): grouped quaternion convolution is not implemented.
        raise NotImplementedError("groups != 1 not supported")

    N, Cin, H, W = x.shape
    O4, I4, kH, kW = r_w.shape
    assert Cin == 4 * I4, "input channel count must equal 4 * (in_channels // 4)"
    Cout = 4 * O4
    K = kH * kW * Cin

    # Hamilton weight assembly (tiny, once, plain JAX); reshape to (Cout, K) with the
    # K axis ordered (kh, kw, cin) to match the kernel's im2col slab. Emit in the
    # input dtype so bf16 inputs hit the MXU at full rate (accumulation stays f32).
    w_full = hamilton_weight(r_w, i_w, j_w, k_w)                    # (Cout, Cin, kH, kW)
    w_mat = jnp.transpose(w_full, (0, 2, 3, 1)).reshape(Cout, K).astype(x.dtype)

    # NHWC layout (channels minor) + spatial zero padding (conv semantics).
    x_nhwc = jnp.transpose(x, (0, 2, 3, 1))
    if padding:
        x_nhwc = jnp.pad(x_nhwc, ((0, 0), (padding, padding),
                                  (padding, padding), (0, 0)))
    Hp, Wp = H + 2 * padding, W + 2 * padding
    Ho = (Hp - dilation * (kH - 1) - 1) // stride + 1
    Wo = (Wp - dilation * (kW - 1) - 1) // stride + 1

    b2 = (jnp.zeros((Cout, 1), jnp.float32) if bias is None
          else jnp.asarray(bias, jnp.float32).reshape(Cout, 1))

    kernel = functools.partial(_qconv2d_kernel, kH=kH, kW=kW, Ho=Ho, Wo=Wo,
                               Cin=Cin, stride=stride, dilation=dilation)

    itemsize = jnp.dtype(x.dtype).itemsize
    cost = pl.CostEstimate(
        flops=int(2 * N * Ho * Wo * Cout * K),
        transcendentals=0,
        bytes_accessed=int(N * Hp * Wp * Cin * itemsize      # input
                           + Cout * K * itemsize             # weight
                           + Cout * 4                        # bias (f32)
                           + N * Cout * Ho * Wo * itemsize)  # output
    )

    out = pl.pallas_call(
        kernel,
        out_shape=jax.ShapeDtypeStruct((N, Cout, Ho * Wo), x.dtype),
        grid=(N,),
        in_specs=[
            pl.BlockSpec((1, Hp, Wp, Cin), lambda n: (n, 0, 0, 0)),
            pl.BlockSpec((Cout, K), lambda n: (0, 0)),
            pl.BlockSpec((Cout, 1), lambda n: (0, 0)),
        ],
        out_specs=pl.BlockSpec((1, Cout, Ho * Wo), lambda n: (n, 0, 0)),
        compiler_params=pltpu.CompilerParams(
            dimension_semantics=("parallel",)),
        cost_estimate=cost,
    )(x_nhwc, w_mat, b2)

    # (N, Cout, Ho*Wo) is already channel-major: NCHW is a free reshape (no transpose).
    return out.reshape(N, Cout, Ho, Wo)


if __name__ == "__main__":
    key = jax.random.PRNGKey(0)
    k_x, k_r, k_i, k_j, k_k, k_b = jax.random.split(key, 6)

    # _QConv(in_channels=16, out_channels=16, kernel_size=3, stride=1, padding=1)
    N, Cin, H, W = 2, 16, 16, 16
    Cout, kH, kW = 16, 3, 3
    O4, I4 = Cout // 4, Cin // 4
    stride, padding, dilation = 1, 1, 1

    x = jax.random.normal(k_x, (N, Cin, H, W), dtype=jnp.float32)
    # Deterministic stand-in for quaternion_init (host-side init is not a forward op).
    r_w = 0.1 * jax.random.normal(k_r, (O4, I4, kH, kW), dtype=jnp.float32)
    i_w = 0.1 * jax.random.normal(k_i, (O4, I4, kH, kW), dtype=jnp.float32)
    j_w = 0.1 * jax.random.normal(k_j, (O4, I4, kH, kW), dtype=jnp.float32)
    k_w = 0.1 * jax.random.normal(k_k, (O4, I4, kH, kW), dtype=jnp.float32)
    bias = 0.1 * jax.random.normal(k_b, (Cout,), dtype=jnp.float32)

    out = quaternion_conv2d(x, r_w, i_w, j_w, k_w, bias,
                            stride=stride, padding=padding, dilation=dilation)
    out = jax.block_until_ready(out)

    # Pure-JAX/XLA reference of the exact PyTorch quaternion_conv semantics.
    w_full = hamilton_weight(r_w, i_w, j_w, k_w)
    ref = jax.lax.conv_general_dilated(
        x.astype(jnp.float32), w_full,
        window_strides=(stride, stride),
        padding=((padding, padding), (padding, padding)),
        rhs_dilation=(dilation, dilation),
        dimension_numbers=("NCHW", "OIHW", "NCHW"),
        feature_group_count=1)
    ref = ref + bias.reshape(1, Cout, 1, 1)

    np.testing.assert_allclose(np.asarray(out), np.asarray(ref),
                               rtol=2e-2, atol=2e-2)
    print("KERNEL_OK")
</pallas_src>

<mosaic_0001>
module attributes {stable_mosaic.version = 11 : i64} {
  func.func @_qconv2d_kernel(%arg0: i32, %arg1: memref<1x18x18x16xf32, #tpu.memory_space<vmem>>, %arg2: memref<16x144xf32, #tpu.memory_space<vmem>>, %arg3: memref<16x1xf32, #tpu.memory_space<vmem>>, %arg4: memref<1x16x256xf32, #tpu.memory_space<vmem>>) attributes {dimension_semantics = [#tpu.dimension_semantics<parallel>], iteration_bounds = array<i64: 2>, scalar_prefetch = 0 : i64, scratch_operands = 0 : i64, tpu.core_type = #tpu.core_type<tc>, window_params = [{transform_indices = @transform_0, window_bounds = array<i64: 1, 18, 18, 16>}, {pipeline_mode = #tpu.pipeline_mode<synchronous>, transform_indices = @transform_1, window_bounds = array<i64: 16, 144>}, {pipeline_mode = #tpu.pipeline_mode<synchronous>, transform_indices = @transform_2, window_bounds = array<i64: 16, 1>}, {transform_indices = @transform_3, window_bounds = array<i64: 1, 16, 256>}]} {
    %c0 = arith.constant 0 : index
    %c0_0 = arith.constant 0 : index
    %c0_1 = arith.constant 0 : index
    %c0_2 = arith.constant 0 : index
    %0 = vector.load %arg1[%c0, %c0_0, %c0_1, %c0_2] : memref<1x18x18x16xf32, #tpu.memory_space<vmem>>, vector<1x18x18x16xf32>
    %1 = vector.shape_cast %0 : vector<1x18x18x16xf32> to vector<18x18x16xf32>
    %2 = vector.extract_strided_slice %1 {offsets = [0, 0, 0], sizes = [16, 16, 16], strides = [1, 1, 1]} : vector<18x18x16xf32> to vector<16x16x16xf32>
    %3 = vector.shape_cast %2 : vector<16x16x16xf32> to vector<256x16xf32>
    %4 = vector.extract_strided_slice %1 {offsets = [0, 1, 0], sizes = [16, 16, 16], strides = [1, 1, 1]} : vector<18x18x16xf32> to vector<16x16x16xf32>
    %5 = vector.shape_cast %4 : vector<16x16x16xf32> to vector<256x16xf32>
    %6 = vector.extract_strided_slice %1 {offsets = [0, 2, 0], sizes = [16, 16, 16], strides = [1, 1, 1]} : vector<18x18x16xf32> to vector<16x16x16xf32>
    %7 = vector.shape_cast %6 : vector<16x16x16xf32> to vector<256x16xf32>
    %8 = vector.extract_strided_slice %1 {offsets = [1, 0, 0], sizes = [16, 16, 16], strides = [1, 1, 1]} : vector<18x18x16xf32> to vector<16x16x16xf32>
    %9 = vector.shape_cast %8 : vector<16x16x16xf32> to vector<256x16xf32>
    %10 = vector.extract_strided_slice %1 {offsets = [1, 1, 0], sizes = [16, 16, 16], strides = [1, 1, 1]} : vector<18x18x16xf32> to vector<16x16x16xf32>
    %11 = vector.shape_cast %10 : vector<16x16x16xf32> to vector<256x16xf32>
    %12 = vector.extract_strided_slice %1 {offsets = [1, 2, 0], sizes = [16, 16, 16], strides = [1, 1, 1]} : vector<18x18x16xf32> to vector<16x16x16xf32>
    %13 = vector.shape_cast %12 : vector<16x16x16xf32> to vector<256x16xf32>
    %14 = vector.extract_strided_slice %1 {offsets = [2, 0, 0], sizes = [16, 16, 16], strides = [1, 1, 1]} : vector<18x18x16xf32> to vector<16x16x16xf32>
    %15 = vector.shape_cast %14 : vector<16x16x16xf32> to vector<256x16xf32>
    %16 = vector.extract_strided_slice %1 {offsets = [2, 1, 0], sizes = [16, 16, 16], strides = [1, 1, 1]} : vector<18x18x16xf32> to vector<16x16x16xf32>
    %17 = vector.shape_cast %16 : vector<16x16x16xf32> to vector<256x16xf32>
    %18 = vector.extract_strided_slice %1 {offsets = [2, 2, 0], sizes = [16, 16, 16], strides = [1, 1, 1]} : vector<18x18x16xf32> to vector<16x16x16xf32>
    %19 = vector.shape_cast %18 : vector<16x16x16xf32> to vector<256x16xf32>
    %20 = tpu.concatenate %3, %5, %7, %9, %11, %13, %15, %17, %19 in 1 : vector<256x16xf32>, vector<256x16xf32>, vector<256x16xf32>, vector<256x16xf32>, vector<256x16xf32>, vector<256x16xf32>, vector<256x16xf32>, vector<256x16xf32>, vector<256x16xf32> -> vector<256x144xf32>
    %c0_3 = arith.constant 0 : index
    %c0_4 = arith.constant 0 : index
    %21 = vector.load %arg2[%c0_3, %c0_4] : memref<16x144xf32, #tpu.memory_space<vmem>>, vector<16x144xf32>
    %cst = arith.constant dense<0.000000e+00> : vector<16x256xf32>
    %22 = tpu.matmul %21, %20, %cst {dimension_numbers = #tpu.dot_dimension_numbers<[1], [1], [0], [0], [0, 0, 1, 0], [], []>} : vector<16x144xf32>, vector<256x144xf32>, vector<16x256xf32> -> vector<16x256xf32>
    %c0_5 = arith.constant 0 : index
    %c0_6 = arith.constant 0 : index
    %23 = vector.load %arg3[%c0_5, %c0_6] : memref<16x1xf32, #tpu.memory_space<vmem>>, vector<16x1xf32>
    %24 = vector.broadcast %23 : vector<16x1xf32> to vector<16x256xf32>
    %25 = arith.addf %22, %24 : vector<16x256xf32>
    %c0_7 = arith.constant 0 : index
    %c0_8 = arith.constant 0 : index
    %c0_9 = arith.constant 0 : index
    %26 = vector.load %arg4[%c0_7, %c0_8, %c0_9] : memref<1x16x256xf32, #tpu.memory_space<vmem>>, vector<1x16x256xf32>
    %27 = vector.shape_cast %26 : vector<1x16x256xf32> to vector<16x256xf32>
    %28 = vector.shape_cast %25 : vector<16x256xf32> to vector<1x16x256xf32>
    tpu.vector_store %arg4[%c0_7, %c0_8, %c0_9], %28 {strides = array<i32>} : memref<1x16x256xf32, #tpu.memory_space<vmem>>, vector<1x16x256xf32>,
    return
  }
  func.func @transform_0(%arg0: i32) -> (i32, i32, i32, i32) {
    %c0_i32 = arith.constant 0 : i32
    %c0_i32_0 = arith.constant 0 : i32
    %c0_i32_1 = arith.constant 0 : i32
    %c0_i32_2 = arith.constant 0 : i32
    return %arg0, %c0_i32, %c0_i32_0, %c0_i32_1 : i32, i32, i32, i32
  }
  func.func @transform_1(%arg0: i32) -> (i32, i32) {
    %c0_i32 = arith.constant 0 : i32
    %c0_i32_0 = arith.constant 0 : i32
    %c0_i32_1 = arith.constant 0 : i32
    return %c0_i32, %c0_i32_0 : i32, i32
  }
  func.func @transform_2(%arg0: i32) -> (i32, i32) {
    %c0_i32 = arith.constant 0 : i32
    %c0_i32_0 = arith.constant 0 : i32
    %c0_i32_1 = arith.constant 0 : i32
    return %c0_i32, %c0_i32_0 : i32, i32
  }
  func.func @transform_3(%arg0: i32) -> (i32, i32, i32) {
    %c0_i32 = arith.constant 0 : i32
    %c0_i32_0 = arith.constant 0 : i32
    %c0_i32_1 = arith.constant 0 : i32
    return %arg0, %c0_i32, %c0_i32_0 : i32, i32, i32
  }
}

</mosaic_0001>

<bundles_post_ra>
// kernel: tpu_custom_call.1
= control target key start
LH: loop header
LB: loop body
LE: loop exit
PB: predicated region body
PF: predicated region fallthrough
CT: control target
= control target key end

     0   :  { %8 = vsyncpa [#allocation3], 0  ;;  %s3411_s0 = inlined_call_operand.vmem [shape: f32[2,18,18,16], index: 0, kind: input, shape index: {}]   ;;  %s3412_s1 = inlined_call_operand.vmem [shape: f32[16,144], index: 1, kind: input, shape index: {}]   ;;  %s3413_s2 = inlined_call_operand.vmem [shape: f32[16,1], index: 2, kind: input, shape index: {}]   ;;  %s3414_s3 = inlined_call_operand.hbm [shape: f32[2,16,256], index: 3, kind: output, shape index: {}]  }
   0x1   :  { %10 = vsyncpa [#allocation3 + $0x1], 0  ;;  %s1884_s12 = smov 0   ;;  %s1886_s13 = smov 0  }
   0x2   :  { %s1888_s14 = smov 0   ;;  %s1890_s15 = smov 0  }
   0x3 LB: > { %s1905_s16 = sadd.s32 4294967295, %s1852_s15   ;;  %s1605_s17 = sadd.s32 4294967294, %s1852_s15   ;;  %s1852_s15 = sphi %s1890_s15, %s3552_s15   ;;  %s1848_s14 = sphi %s1888_s14, %s3551_s14   ;;  %s1844_s13 = sphi %s1886_s13, %s3550_s13   ;;  %s1840_s12 = sphi %s1884_s12, %s3549_s12  }
   0x4   : > { %s1909_s18 = sadd.s32 1, %s1852_s15   ;;  %s91_s19 = sadd.s32 1, %s1848_s14 }
   0x5   : > { %s88_s20 = ssub.s32 %s1852_s15, %s1909_s18  ;;  %p101_p0 = scmp.ne.s32.totalorder %s1848_s14, %s1844_s13 }
   0x6   : > { %p89_p1 = scmp.eq.s32.totalorder %s88_s20, 0  ;;  %p102_p2 = scmp.eq.s32.totalorder %s1905_s16, 1 }
   0x7   : > { %p107_p3 = scmp.ne.s32.totalorder %s1844_s13, %s1840_s12  ;;  %p108_p4 = scmp.eq.s32.totalorder %s1605_s17, 1 }
   0x8   : > { %s1920_s21 = scalar_select %p89_p1, %s1848_s14, %s91_s19  }
   0x9   : > { %p1922_p5 = por %p102_p2, %p101_p0  ;;  %p1926_p6 = por %p108_p4, %p107_p3 }
   0xa   : > { %p1608_p7 = scmp.ge.s32.totalorder %s1852_s15, 1  ;;  %p140_p8 = scmp.lt.s32.totalorder %s1852_s15, 3 }
   0xc   : > { %p141_p9 = pnand %p1608_p7, %p140_p8 }
   0xe   : > { %144 = sbr.rel (%p141_p9) target bundleno = 806 (0x326), region = 32 }
  0x13   : > { %p164_p10 = scmp.lt.s32.totalorder %s1905_s16, 1  ;;  %vm271_vm0 = vcmask 1046528   ;;  %s1854_s29 = smov 16   ;;  %vm352_vm1 = vcmask 1045504   ;;  %vm1131_vm2 = vcmask 130048   ;;  %vm1164_vm3 = vcmask 261120  }
  0x14   : > { %s1855_s30 = smov 32   ;;  %s1856_s4 = smov 48   ;;  %vm1197_vm4 = vcmask 392192   ;;  %vm1230_vm5 = vcmask 523264   ;;  %vm1263_vm6 = vcmask 654336   ;;  %vm1296_vm7 = vcmask 785408  }
  0x15   : > { %s165_s24 = scalar_select %p164_p10, %s1905_s16, 1  ;;  %vm1329_vm8 = vcmask 916480  }
  0x16   : > { %s1857_s5 = smov 80   ;;  %s1858_s6 = smov 64  }
  0x17   : > { %s1715_s25 = smul.u32 432, %s165_s24  ;;  %s1859_s7 = smov 96  }
  0x18   : > { %s1860_s8 = smov 112   ;;  %s1862_s19 = smov [#allocation2]  }
  0x19   : > { %s1937_s28 = scalar_lea.vmem %s3411_s0, %s1715_s25  ;;  %s1796_s20 = sshll.u32 %s1862_s19, 4  ;;  %s1797_s20 = int_to_ptr.vmem [resolvable:$false] %s1796_s20 }
  0x1a   : > { %v1940_v0 = vld [vmem:[%s1937_s28 + $0x18] sm:$0xff]  ;;  %v1943_v1 = vld [vmem:[%s1937_s28 + $0x20] sm:$0xff]  ;;  %v1951_v5 = vld [vmem:[%s1937_s28 + $0x8] sm:$0xff]  ;;  %s1798_s24 = scalar_lea.vmem %s1797_s20, 1024 }
  0x1b   : > { %v1946_v2 = vld [vmem:[%s1937_s28] sm:$0xff]  ;;  %v277_v3 = vrot.slane %v1940_v0, 1  ;;  %v278_v4 = vrot.slane %v1943_v1, 1  ;;  %v1955_v7 = vld [vmem:[%s1937_s28 + $0x28] sm:$0x3]  ;;  %v273_v8 = vrot.slane %v1951_v5, 1 }
  0x1c   : > { %v272_v6 = vrot.slane %v1946_v2, 1  ;;  %v280_v9 = vrot.slane %v1955_v7, 1  ;;  %v1960_v10 = vld [vmem:[%s1937_s28 + $0x10] sm:$0x3]  ;;  %v1963_v11 = vld [vmem:[%s1937_s28 + $0x38] sm:$0xff]  ;;  %v1993_v24 = vld [vmem:[%s1937_s28 + $0x48] sm:$0xff] }
  0x1d   : > { %v1966_v12 = vsel %vm271_vm0, %v277_v3, %v278_v4  ;;  %v275_v13 = vrot.slane %v1960_v10, 1  ;;  %v1970_v14 = vld [vmem:[%s1937_s28 + $0x40] sm:$0x3]  ;;  %v1973_v15 = vld [vmem:[%s1937_s28 + $0x30] sm:$0xff]  ;;  %v283_v18 = vrot.slane %v1963_v11, 1  ;;  %v287_v29 = vrot.slane %v1993_v24, 1 }
  0x1e   : > { %463 = vrot.lane.b32.xlu1 %v1966_v12, %s1854_s29  ;;  %v274_v16 = vsel %vm271_vm0, %v272_v6, %v273_v8  ;;  %v1980_v17 = vsel %vm271_vm0, %v278_v4, %v280_v9  ;;  %v285_v19 = vrot.slane %v1970_v14, 1  ;;  %v282_v21 = vrot.slane %v1973_v15, 1  ;;  %v1987_v22 = vld [vmem:[%s1937_s28 + $0x50] sm:$0xff]  ;;  %v1990_v23 = vld [vmem:[%s1937_s28 + $0x58] sm:$0x3]  ;;  %v2008_v30 = vld [vmem:[%s1937_s28 + $0x68] sm:$0xff] }
  0x1f   : > { %459 = vrot.lane.b32.xlu0 %v274_v16, %s1854_s29  ;;  %v276_v20 = vsel %vm271_vm0, %v273_v8, %v275_v13  ;;  %v288_v26 = vrot.slane %v1987_v22, 1  ;;  %v290_v27 = vrot.slane %v1990_v23, 1  ;;  %v2011_v31 = vld [vmem:[%s1937_s28 + $0x70] sm:$0x3]  ;;  %v2014_v32 = vld [vmem:[%s1937_s28 + $0x60] sm:$0xff]  ;;  %v293_v34 = vrot.slane %v2008_v30, 1 }
  0x20   : > { %v1999_v25 = vsel %vm271_vm0, %v283_v18, %v285_v19  ;;  %v2004_v28 = vsel %vm271_vm0, %v282_v21, %v283_v18  ;;  %v295_v35 = vrot.slane %v2011_v31, 1  ;;  %v292_v37 = vrot.slane %v2014_v32, 1  ;;  %v2030_v38 = vld [vmem:[%s1937_s28 + $0x80] sm:$0xff]  ;;  %v2033_v39 = vld [vmem:[%s1937_s28 + $0x88] sm:$0x3]  ;;  %v2036_v40 = vld [vmem:[%s1937_s28 + $0x78] sm:$0xff] }
  0x21   : > { %v2021_v33 = vsel %vm271_vm0, %v288_v26, %v290_v27  ;;  %v2026_v36 = vsel %vm271_vm0, %v287_v29, %v288_v26  ;;  %v298_v42 = vrot.slane %v2030_v38, 1  ;;  %v300_v43 = vrot.slane %v2033_v39, 1  ;;  %v2052_v46 = vld [vmem:[%s1937_s28 + $0x98] sm:$0xff]  ;;  %v2055_v47 = vld [vmem:[%s1937_s28 + $0xa0] sm:$0x3]  ;;  %v2058_v48 = vld [vmem:[%s1937_s28 + $0x90] sm:$0xff] }
  0x22   : > { %465 = vrot.lane.b32.xlu1 %v1980_v17, %s1854_s29  ;;  %v2043_v41 = vsel %vm271_vm0, %v293_v34, %v295_v35  ;;  %v2048_v44 = vsel %vm271_vm0, %v292_v37, %v293_v34  ;;  %v297_v45 = vrot.slane %v2036_v40, 1  ;;  %v303_v50 = vrot.slane %v2052_v46, 1  ;;  %v2074_v54 = vld [vmem:[%s1937_s28 + $0xb0] sm:$0xff]  ;;  %v2077_v55 = vld [vmem:[%s1937_s28 + $0xb8] sm:$0x3]  ;;  %v2080_v56 = vld [vmem:[%s1937_s28 + $0xa8] sm:$0xff] }
  0x23   : > { %461 = vrot.lane.b32.xlu0 %v276_v20, %s1854_s29  ;;  %v2065_v49 = vsel %vm271_vm0, %v298_v42, %v300_v43  ;;  %v305_v51 = vrot.slane %v2055_v47, 1  ;;  %v302_v53 = vrot.slane %v2058_v48, 1  ;;  %v308_v58 = vrot.slane %v2074_v54, 1  ;;  %v2096_v62 = vld [vmem:[%s1937_s28 + $0xc8] sm:$0xff]  ;;  %v2099_v63 = vld [vmem:[%s1937_s28 + $0xd0] sm:$0x3] }
  0x24   : > { %v2070_v52 = vsel %vm271_vm0, %v297_v45, %v298_v42  ;;  %v310_v59 = vrot.slane %v2077_v55, 1  ;;  %v307_v61 = vrot.slane %v2080_v56, 1  ;;  %v2102_v3 = vld [vmem:[%s1937_s28 + $0xc0] sm:$0xff]  ;;  %v313_v6 = vrot.slane %v2096_v62, 1  ;;  %v2121_v18 = vld [vmem:[%s1937_s28 + $0xe8] sm:$0x3] }
  0x25   : > { %v2087_v57 = vsel %vm271_vm0, %v303_v50, %v305_v51  ;;  %v2092_v60 = vsel %vm271_vm0, %v302_v53, %v303_v50  ;;  %v315_v8 = vrot.slane %v2099_v63, 1  ;;  %v312_v13 = vrot.slane %v2102_v3, 1  ;;  %v2118_v16 = vld [vmem:[%s1937_s28 + $0xe0] sm:$0xff]  ;;  %v2124_v19 = vld [vmem:[%s1937_s28 + $0xd8] sm:$0xff]  ;;  %v199_v37 = vld [vmem:[%s1937_s28 + $0xf0] sm:$0xff] }
  0x26   : > { %469 = vrot.lane.b32.xlu1 %v1999_v25, %s1854_s29  ;;  %v2109_v4 = vsel %vm271_vm0, %v308_v58, %v310_v59  ;;  %v2114_v9 = vsel %vm271_vm0, %v307_v61, %v308_v58  ;;  %v318_v21 = vrot.slane %v2118_v16, 1  ;;  %v320_v26 = vrot.slane %v2121_v18, 1  ;;  %v200_v34 = vld [vmem:[%s1937_s28 + $0xf8] sm:$0xff]  ;;  %v201_v35 = vld [vmem:[%s1937_s28 + $0x100] sm:$0x3]  ;;  %v203_v53 = vld [vmem:[%s1937_s28 + $0x110] sm:$0xff] }
  0x27   : > { %467 = vrot.lane.b32.xlu0 %v2004_v28, %s1854_s29  ;;  %v2131_v20 = vsel %vm271_vm0, %v313_v6, %v315_v8  ;;  %v2136_v27 = vsel %vm271_vm0, %v312_v13, %v313_v6  ;;  %v317_v29 = vrot.slane %v2124_v19, 1  ;;  %v323_v43 = vrot.slane %v200_v34, 1  ;;  %v204_v58 = vld [vmem:[%s1937_s28 + $0x118] sm:$0x3]  ;;  %v202_v59 = vld [vmem:[%s1937_s28 + $0x108] sm:$0xff]  ;;  %v205_v34 = vld [vmem:[%s1937_s28 + $0x120] sm:$0xff] }
  0x28   : > { %v2147_v42 = vsel %vm271_vm0, %v318_v21, %v320_v26  ;;  %v325_v45 = vrot.slane %v201_v35, 1  ;;  %v322_v51 = vrot.slane %v199_v37, 1  ;;  %v328_v6 = vrot.slane %v203_v53, 1  ;;  %v2166_v26 = vld [vmem:[%s1937_s28 + $0x128] sm:$0xff]  ;;  %v2185_v53 = vld [vmem:[%s1937_s28 + $0x140] sm:$0xff] }
  0x29   : > { %3456 = vst [vmem:[#allocation5_spill] sm:$0xff] %v2147_v42  ;;  %v2150_v50 = vsel %vm271_vm0, %v317_v29, %v318_v21  ;;  %v330_v8 = vrot.slane %v204_v58, 1  ;;  %v327_v21 = vrot.slane %v202_v59, 1  ;;  %3460 = vst [vmem:[#allocation9_spill] sm:$0xff] %v2166_v26  ;;  %v2169_v29 = vld [vmem:[%s1937_s28 + $0x130] sm:$0x3] }
  0x2a   : > { %473 = vrot.lane.b32.xlu1 %v2021_v33, %s1854_s29  ;;  %3457 = vst [vmem:[#allocation6_spill] sm:$0xff] %v2150_v50  ;;  %v2160_v61 = vsel %vm271_vm0, %v323_v43, %v325_v45  ;;  %v2163_v13 = vsel %vm271_vm0, %v322_v51, %v323_v43  ;;  %3461 = vst [vmem:[#allocation10_spill] sm:$0xff] %v2169_v29  ;;  %v333_v37 = vrot.slane %v2166_v26, 1  ;;  %v335_v43 = vrot.slane %v2169_v29, 1  ;;  %v2188_v58 = vld [vmem:[%s1937_s28 + $0x148] sm:$0x3] }
  0x2b   : > { %471 = vrot.lane.b32.xlu0 %v2026_v36, %s1854_s29  ;;  %3458 = vst [vmem:[#allocation7_spill] sm:$0xff] %v2160_v61  ;;  %3459 = vst [vmem:[#allocation8_spill] sm:$0xff] %v2163_v13  ;;  %v2177_v35 = vsel %vm271_vm0, %v328_v6, %v330_v8  ;;  %v2182_v45 = vsel %vm271_vm0, %v327_v21, %v328_v6  ;;  %v332_v51 = vrot.slane %v205_v34, 1  ;;  %v2191_v59 = vld [vmem:[%s1937_s28 + $0x138] sm:$0xff]  ;;  %v338_v6 = vrot.slane %v2185_v53, 1 }
  0x2c   : > { %3462 = vst [vmem:[#allocation11_spill] sm:$0xff] %v2177_v35  ;;  %3463 = vst [vmem:[#allocation12_spill] sm:$0xff] %v2182_v45  ;;  %v2198_v8 = vsel %vm271_vm0, %v333_v37, %v335_v43  ;;  %v340_v21 = vrot.slane %v2188_v58, 1 }
  0x2d   : > { %3464 = vst [vmem:[#allocation13_spill] sm:$0xff] %v2185_v53  ;;  %3465 = vst [vmem:[#allocation14_spill] sm:$0xff] %v2188_v58  ;;  %v2203_v34 = vsel %vm271_vm0, %v332_v51, %v333_v37  ;;  %v2232_v58 = vld [vmem:[%s1937_s28 + $0x178] sm:$0x3] }
  0x2e   : > { %477 = vrot.lane.b32.xlu1 %v2043_v41, %s1854_s29  ;;  %3466 = vst [vmem:[#allocation15_spill] sm:$0xff] %v2191_v59  ;;  %3467 = vst [vmem:[#allocation16_spill] sm:$0xff] %v2198_v8  ;;  %v2220_v43 = vsel %vm271_vm0, %v338_v6, %v340_v21 }
  0x2f   : > { %475 = vrot.lane.b32.xlu0 %v2048_v44, %s1854_s29  ;;  %3468 = vst [vmem:[#allocation17_spill] sm:$0xff] %v2203_v34  ;;  %3470 = vst [vmem:[#allocation19_spill] sm:$0xff] %v2220_v43 }
  0x32   : > { %481 = vrot.lane.b32.xlu1 %v2065_v49, %s1854_s29 }
  0x33   : > { %479 = vrot.lane.b32.xlu0 %v2070_v52, %s1854_s29 }
  0x36   : > { %485 = vrot.lane.b32.xlu1 %v2087_v57, %s1854_s29 }
  0x37   : > { %483 = vrot.lane.b32.xlu0 %v2092_v60, %s1854_s29 }
  0x3a   : > { %489 = vrot.lane.b32.xlu1 %v2109_v4, %s1854_s29 }
  0x3b   : > { %487 = vrot.lane.b32.xlu0 %v2114_v9, %s1854_s29 }
  0x3e   : > { %493 = vrot.lane.b32.xlu1 %v2131_v20, %s1854_s29 }
  0x3f   : > { %491 = vrot.lane.b32.xlu0 %v2136_v27, %s1854_s29 }
  0x42   : > { %497 = vrot.lane.b32.xlu1 %v2147_v42, %s1854_s29 }
  0x43   : > { %495 = vrot.lane.b32.xlu0 %v2150_v50, %s1854_s29 }
  0x46   : > { %501 = vrot.lane.b32.xlu1 %v2160_v61, %s1854_s29  ;;  %v2207_v61 = vld [vmem:[%s1937_s28 + $0x158] sm:$0xff] }
  0x47   : > { %499 = vrot.lane.b32.xlu0 %v2163_v13, %s1854_s29  ;;  %v337_v13 = vrot.slane %v2191_v59, 1  ;;  %v343_v37 = vrot.slane %v2207_v61, 1  ;;  %v2229_v59 = vld [vmem:[%s1937_s28 + $0x170] sm:$0xff] }
  0x49   : > { %v2225_v29 = vsel %vm271_vm0, %v337_v13, %v338_v6  ;;  %v348_v13 = vrot.slane %v2229_v59, 1  ;;  %v350_v6 = vrot.slane %v2232_v58, 1 }
  0x4a   : > { %505 = vrot.lane.b32.xlu1 %v2177_v35, %s1854_s29  ;;  %v2210_v35 = vld [vmem:[%s1937_s28 + $0x160] sm:$0x3]  ;;  %3471 = vst [vmem:[#allocation20_spill] sm:$0xff] %v2225_v29 }
  0x4b   : > { %503 = vrot.lane.b32.xlu0 %v2182_v45, %s1854_s29  ;;  %v2213_v45 = vld [vmem:[%s1937_s28 + $0x150] sm:$0xff]  ;;  %v345_v51 = vrot.slane %v2210_v35, 1 }
  0x4c   : > { %3469 = vst [vmem:[#allocation18_spill] sm:$0xff] %v2213_v45  ;;  %v342_v26 = vrot.slane %v2213_v45, 1 }
  0x4d   : > { %v2242_v21 = vsel %vm271_vm0, %v343_v37, %v345_v51  ;;  %v354_v51 = vrot.slane %v1951_v5, 2  ;;  %v389_v5 = vrot.slane %v2074_v54, 2 }
  0x4e   : > { %509 = vrot.lane.b32.xlu1 %v2198_v8, %s1854_s29  ;;  %v2235_v8 = vld [vmem:[%s1937_s28 + $0x168] sm:$0xff]  ;;  %3472 = vst [vmem:[#allocation21_spill] sm:$0xff] %v2242_v21 }
  0x4f   : > { %507 = vrot.lane.b32.xlu0 %v2203_v34, %s1854_s29  ;;  %v2247_v34 = vsel %vm271_vm0, %v342_v26, %v343_v37  ;;  %v347_v53 = vrot.slane %v2235_v8, 1  ;;  %v353_v26 = vrot.slane %v1946_v2, 2  ;;  %v394_v2 = vrot.slane %v2096_v62, 2 }
  0x50   : > { %3473 = vst [vmem:[#allocation22_spill] sm:$0xff] %v2247_v34 }
  0x51   : > { %v2260_v45 = vsel %vm271_vm0, %v347_v53, %v348_v13  ;;  %v396_v53 = vrot.slane %v2099_v63, 2 }
  0x52   : > { %513 = vrot.lane.b32.xlu1 %v2220_v43, %s1854_s29  ;;  %v356_v43 = vrot.slane %v1960_v10, 2  ;;  %3474 = vst [vmem:[#allocation23_spill] sm:$0xff] %v2260_v45  ;;  %v391_v10 = vrot.slane %v2077_v55, 2 }
  0x53   : > { %511 = vrot.lane.b32.xlu0 %v2225_v29, %s1854_s29  ;;  %v2255_v29 = vsel %vm271_vm0, %v348_v13, %v350_v6  ;;  %v355_v6 = vsel %vm352_vm1, %v353_v26, %v354_v51  ;;  %v3441_v13 = vrot.slane %v2118_v16, 2  ;;  %v2292_v63 = vsel %vm352_vm1, %v394_v2, %v396_v53 }
  0x54   : > { %v357_v37 = vsel %vm352_vm1, %v354_v51, %v356_v43  ;;  %v2278_v43 = vsel %vm352_vm1, %v389_v5, %v391_v10  ;;  %v393_v51 = vrot.slane %v2102_v3, 2  ;;  %v381_v53 = vrot.slane %v2033_v39, 2 }
  0x56   : > { %517 = vrot.lane.b32.xlu1 %v2242_v21, %s1854_s29  ;;  %v2314_v26 = vsel %vm352_vm1, %v393_v51, %v394_v2  ;;  %v379_v2 = vrot.slane %v2030_v38, 2  ;;  %v378_v51 = vrot.slane %v2036_v40, 2 }
  0x57   : > { %515 = vrot.lane.b32.xlu0 %v2247_v34, %s1854_s29  ;;  %v401_v34 = vrot.slane %v2121_v18, 2  ;;  %v388_v18 = vrot.slane %v2080_v56, 2 }
  0x59   : > { %v2283_v55 = vsel %vm352_vm1, %v3441_v13, %v401_v34  ;;  %v2302_v34 = vsel %vm352_vm1, %v388_v18, %v389_v5  ;;  %v376_v13 = vrot.slane %v2011_v31, 2 }
  0x5a   : > { %521 = vrot.lane.b32.xlu1 %v2255_v29, %s1854_s29  ;;  %3475 = vst [vmem:[#allocation24_spill] sm:$0xff] %v2283_v55  ;;  %1611 = vmatprep.subr.msk.mxu0 %vm1131_vm2, %v2283_v55 }
  0x5b   : > { %519 = vrot.lane.b32.xlu0 %v2260_v45, %s1854_s29  ;;  %1651 = vmatprep.subr.msk.mxu1 %vm1131_vm2, %v2283_v55 }
  0x5e   : > { %557 = vrot.lane.b32.xlu1 %v357_v37, %s1855_s30  ;;  %v384_v37 = vrot.slane %v2052_v46, 2 }
  0x5f   : > { %555 = vrot.lane.b32.xlu0 %v355_v6, %s1855_s30  ;;  %v386_v6 = vrot.slane %v2055_v47, 2  ;;  %v383_v47 = vrot.slane %v2058_v48, 2 }
  0x61   : > { %v2323_v5 = vsel %vm352_vm1, %v384_v37, %v386_v6  ;;  %v2339_v10 = vsel %vm352_vm1, %v383_v47, %v384_v37  ;;  %v2382_v6 = vsel %vm352_vm1, %v378_v51, %v379_v2  ;;  %v374_v51 = vrot.slane %v2008_v30, 2 }
  0x62   : > { %681 = vrot.lane.b32.xlu1 %v2096_v62, %s1856_s4 }
  0x63   : > { %585 = vrot.lane.b32.xlu0 %v2278_v43, %s1855_s30 }
  0x66   : > { %873 = vrot.lane.b32.xlu1 %v2292_v63, %s1857_s5 }
  0x67   : > { %777 = vrot.lane.b32.xlu0 %v2131_v20, %s1858_s6 }
  0x6a   : > { %969 = vrot.lane.b32.xlu1 %v2118_v16, %s1859_s7 }
  0x6b   : > { %583 = vrot.lane.b32.xlu0 %v2302_v34, %s1855_s30 }
  0x6e   : > { %1065 = vrot.lane.b32.xlu1 %v2147_v42, %s1860_s8 }
  0x6f   : > { %679 = vrot.lane.b32.xlu0 %v2102_v3, %s1856_s4 }
  0x72   : > { %871 = vrot.lane.b32.xlu1 %v2314_v26, %s1857_s5 }
  0x73   : > { %775 = vrot.lane.b32.xlu0 %v2136_v27, %s1858_s6 }
  0x76   : > { %967 = vrot.lane.b32.xlu1 %v2124_v19, %s1859_s7 }
  0x77   : > { %581 = vrot.lane.b32.xlu0 %v2323_v5, %s1855_s30 }
  0x7a   : > { %1063 = vrot.lane.b32.xlu1 %v2150_v50, %s1860_s8 }
  0x7b   : > { %677 = vrot.lane.b32.xlu0 %v2074_v54, %s1856_s4 }
  0x7e   : > { %869 = vrot.lane.b32.xlu1 %v2278_v43, %s1857_s5 }
  0x7f   : > { %773 = vrot.lane.b32.xlu0 %v2109_v4, %s1858_s6 }
  0x82   : > { %965 = vrot.lane.b32.xlu1 %v2096_v62, %s1859_s7  ;;  %v2356_v62 = vsel %vm352_vm1, %v379_v2, %v381_v53 }
  0x83   : > { %579 = vrot.lane.b32.xlu0 %v2339_v10, %s1855_s30 }
  0x86   : > { %1061 = vrot.lane.b32.xlu1 %v2131_v20, %s1860_s8 }
  0x87   : > { %675 = vrot.lane.b32.xlu0 %v2080_v56, %s1856_s4 }
  0x8a   : > { %867 = vrot.lane.b32.xlu1 %v2302_v34, %s1857_s5 }
  0x8b   : > { %771 = vrot.lane.b32.xlu0 %v2114_v9, %s1858_s6 }
  0x8e   : > { %963 = vrot.lane.b32.xlu1 %v2102_v3, %s1859_s7 }
  0x8f   : > { %577 = vrot.lane.b32.xlu0 %v2356_v62, %s1855_s30 }
  0x90   : > { %v2362_v20 = vpop.permute.xlu1 %463 }
  0x91   : > { %3476 = vst [vmem:[#allocation25_spill] sm:$0xff] %v2362_v20  ;;  %v2364_v18 = vpop.permute.xlu0 %459 }
  0x92   : > { %3477 = vst [vmem:[#allocation26_spill] sm:$0xff] %v2364_v18  ;;  %1059 = vrot.lane.b32.xlu1 %v2136_v27, %s1860_s8 }
  0x93   : > { %673 = vrot.lane.b32.xlu0 %v2052_v46, %s1856_s4 }
  0x94   : > { %v2370_v39 = vpop.permute.xlu1 %465 }
  0x95   : > { %3478 = vst [vmem:[#allocation27_spill] sm:$0xff] %v2370_v39  ;;  %v2373_v37 = vpop.permute.xlu0 %461 }
  0x96   : > { %3479 = vst [vmem:[#allocation28_spill] sm:$0xff] %v2373_v37  ;;  %865 = vrot.lane.b32.xlu1 %v2323_v5, %s1857_s5  ;;  %v373_v37 = vrot.slane %v2014_v32, 2 }
  0x97   : > { %769 = vrot.lane.b32.xlu0 %v2087_v57, %s1858_s6 }
  0x98   : > { %v2379_v3 = vpop.permute.xlu1 %469 }
  0x99   : > { %3480 = vst [vmem:[#allocation29_spill] sm:$0xff] %v2379_v3  ;;  %v2384_v27 = vpop.permute.xlu0 %467 }
  0x9a   : > { %3481 = vst [vmem:[#allocation30_spill] sm:$0xff] %v2384_v27  ;;  %961 = vrot.lane.b32.xlu1 %v2074_v54, %s1859_s7  ;;  %v2437_v27 = vsel %vm352_vm1, %v373_v37, %v374_v51 }
  0x9b   : > { %575 = vrot.lane.b32.xlu0 %v2382_v6, %s1855_s30  ;;  %3484 = vst [vmem:[#allocation33_spill] sm:$0xff] %v2437_v27 }
  0x9c   : > { %v2390_v47 = vpop.permute.xlu1 %473 }
  0x9d   : > { %v2392_v53 = vpop.permute.xlu0 %471 }
  0x9e   : > { %1057 = vrot.lane.b32.xlu1 %v2109_v4, %s1860_s8  ;;  %v2411_v4 = vsel %vm352_vm1, %v374_v51, %v376_v13  ;;  %v369_v51 = vrot.slane %v1987_v22, 2 }
  0x9f   : > { %671 = vrot.lane.b32.xlu0 %v2058_v48, %s1856_s4  ;;  %3482 = vst [vmem:[#allocation31_spill] sm:$0xff] %v2411_v4 }
  0xa0   : > { %v2398_v2 = vpop.permute.xlu1 %477 }
  0xa1   : > { %v2402_v50 = vpop.permute.xlu0 %475 }
  0xa2   : > { %863 = vrot.lane.b32.xlu1 %v2339_v10, %s1857_s5 }
  0xa3   : > { %767 = vrot.lane.b32.xlu0 %v2092_v60, %s1858_s6 }
  0xa4   : > { %v2408_v42 = vpop.permute.xlu1 %481 }
  0xa5   : > { %v2413_v55 = vpop.permute.xlu0 %479 }
  0xa6   : > { %959 = vrot.lane.b32.xlu1 %v2080_v56, %s1859_s7 }
  0xa7   : > { %573 = vrot.lane.b32.xlu0 %v2411_v4, %s1855_s30 }
  0xa8   : > { %v2419_v31 = vpop.permute.xlu1 %485 }
  0xa9   : > { %v2421_v18 = vpop.permute.xlu0 %483 }
  0xaa   : > { %1055 = vrot.lane.b32.xlu1 %v2114_v9, %s1860_s8 }
  0xab   : > { %669 = vrot.lane.b32.xlu0 %v2030_v38, %s1856_s4 }
  0xac   : > { %v490_v13 = vpop.permute.xlu1 %489 }
  0xad   : > { %v2428_v20 = vpop.permute.xlu0 %487 }
  0xae   : > { %861 = vrot.lane.b32.xlu1 %v2356_v62, %s1857_s5 }
  0xaf   : > { %765 = vrot.lane.b32.xlu0 %v2065_v49, %s1858_s6 }
  0xb0   : > { %v2434_v39 = vpop.permute.xlu1 %493 }
  0xb1   : > { %3483 = vst [vmem:[#allocation32_spill] sm:$0xff] %v2434_v39  ;;  %v2439_v9 = vpop.permute.xlu0 %491 }
  0xb2   : > { %3485 = vst [vmem:[#allocation34_spill] sm:$0xff] %v2439_v9  ;;  %957 = vrot.lane.b32.xlu1 %v2052_v46, %s1859_s7  ;;  %v371_v9 = vrot.slane %v1990_v23, 2 }
  0xb3   : > { %571 = vrot.lane.b32.xlu0 %v2437_v27, %s1855_s30 }
  0xb4   : > { %v2445_v21 = vpop.permute.xlu1 %497 }
  0xb5   : > { %3486 = vst [vmem:[#allocation35_spill] sm:$0xff] %v2445_v21  ;;  %v2447_v3 = vpop.permute.xlu0 %495 }
  0xb6   : > { %3487 = vst [vmem:[#allocation36_spill] sm:$0xff] %v2447_v3  ;;  %1053 = vrot.lane.b32.xlu1 %v2087_v57, %s1860_s8  ;;  %v2466_v57 = vsel %vm352_vm1, %v369_v51, %v371_v9 }
  0xb7   : > { %667 = vrot.lane.b32.xlu0 %v2036_v40, %s1856_s4 }
  0xb8   : > { %v2453_v37 = vpop.permute.xlu1 %501 }
  0xb9   : > { %3488 = vst [vmem:[#allocation37_spill] sm:$0xff] %v2453_v37  ;;  %v2457_v39 = vpop.permute.xlu0 %499  ;;  %v368_v37 = vrot.slane %v1993_v24, 2 }
  0xba   : > { %3489 = vst [vmem:[#allocation38_spill] sm:$0xff] %v2457_v39  ;;  %859 = vrot.lane.b32.xlu1 %v2382_v6, %s1857_s5 }
  0xbb   : > { %763 = vrot.lane.b32.xlu0 %v2070_v52, %s1858_s6 }
  0xbc   : > { %v2463_v3 = vpop.permute.xlu1 %505 }
  0xbd   : > { %3490 = vst [vmem:[#allocation39_spill] sm:$0xff] %v2463_v3  ;;  %v2468_v21 = vpop.permute.xlu0 %503 }
  0xbe   : > { %3491 = vst [vmem:[#allocation40_spill] sm:$0xff] %v2468_v21  ;;  %955 = vrot.lane.b32.xlu1 %v2058_v48, %s1859_s7 }
  0xbf   : > { %569 = vrot.lane.b32.xlu0 %v2466_v57, %s1855_s30 }
  0xc0   : > { %v2474_v23 = vpop.permute.xlu1 %509 }
  0xc1   : > { %3492 = vst [vmem:[#allocation41_spill] sm:$0xff] %v2474_v23  ;;  %v2476_v39 = vpop.permute.xlu0 %507 }
  0xc2   : > { %3493 = vst [vmem:[#allocation42_spill] sm:$0xff] %v2476_v39  ;;  %1051 = vrot.lane.b32.xlu1 %v2092_v60, %s1860_s8  ;;  %v2494_v39 = vsel %vm352_vm1, %v368_v37, %v369_v51  ;;  %v364_v51 = vrot.slane %v1963_v11, 2 }
  0xc3   : > { %665 = vrot.lane.b32.xlu0 %v2008_v30, %s1856_s4 }
  0xc4   : > { %v2482_v9 = vpop.permute.xlu1 %513 }
  0xc5   : > { %3494 = vst [vmem:[#allocation43_spill] sm:$0xff] %v2482_v9  ;;  %v2485_v21 = vpop.permute.xlu0 %511  ;;  %v366_v9 = vrot.slane %v1970_v14, 2 }
  0xc6   : > { %3495 = vst [vmem:[#allocation44_spill] sm:$0xff] %v2485_v21  ;;  %857 = vrot.lane.b32.xlu1 %v2411_v4, %s1857_s5 }
  0xc7   : > { %761 = vrot.lane.b32.xlu0 %v2043_v41, %s1858_s6 }
  0xc8   : > { %v2491_v3 = vpop.permute.xlu1 %517 }
  0xc9   : > { %3496 = vst [vmem:[#allocation45_spill] sm:$0xff] %v2491_v3  ;;  %v2496_v60 = vpop.permute.xlu0 %515 }
  0xca   : > { %3497 = vst [vmem:[#allocation46_spill] sm:$0xff] %v2496_v60  ;;  %953 = vrot.lane.b32.xlu1 %v2030_v38, %s1859_s7 }
  0xcb   : > { %567 = vrot.lane.b32.xlu0 %v2494_v39, %s1855_s30 }
  0xcc   : > { %v2502_v23 = vpop.permute.xlu1 %521 }
  0xcd   : > { %3498 = vst [vmem:[#allocation47_spill] sm:$0xff] %v2502_v23  ;;  %v2504_v21 = vpop.permute.xlu0 %519  ;;  %v1147_v23 = vsel %vm1131_vm2, %v2074_v54, %v490_v13 }
  0xce   : > { %3499 = vst [vmem:[#allocation48_spill] sm:$0xff] %v2504_v21  ;;  %1049 = vrot.lane.b32.xlu1 %v2065_v49, %s1860_s8  ;;  %v2521_v49 = vsel %vm352_vm1, %v364_v51, %v366_v9 }
  0xcf   : > { %663 = vrot.lane.b32.xlu0 %v2014_v32, %s1856_s4 }
  0xd0   : > { %v2510_v37 = vpop.permute.xlu1 %557 }
  0xd1   : > { %3500 = vst [vmem:[#allocation49_spill] sm:$0xff] %v2510_v37  ;;  %v2514_v60 = vpop.permute.xlu0 %555 }
  0xd2   : > { %3501 = vst [vmem:[#allocation50_spill] sm:$0xff] %v2514_v60  ;;  %855 = vrot.lane.b32.xlu1 %v2437_v27, %s1857_s5  ;;  %v363_v27 = vrot.slane %v1973_v15, 2 }
  0xd3   : > { %759 = vrot.lane.b32.xlu0 %v2048_v44, %s1858_s6 }
  0xd4   : > { %v682_v3 = vpop.permute.xlu1 %681 }
  0xd5   : > { %v586_v21 = vpop.permute.xlu0 %585 }
  0xd6   : > { %951 = vrot.lane.b32.xlu1 %v2036_v40, %s1859_s7  ;;  %v1180_v14 = vsel %vm1164_vm3, %v1147_v23, %v586_v21  ;;  %v398_v23 = vrot.slane %v2124_v19, 2  ;;  %v3502_v19 = vrot.slane %v2118_v16, 2  ;;  %v1146_v16 = vsel %vm1131_vm2, %v2080_v56, %v2428_v20 }
  0xd7   : > { %565 = vrot.lane.b32.xlu0 %v2521_v49, %s1855_s30  ;;  %v1213_v9 = vsel %vm1197_vm4, %v1180_v14, %v682_v3  ;;  %v2545_v14 = vsel %vm352_vm1, %v363_v27, %v364_v51 }
  0xd8   : > { %v874_v60 = vpop.permute.xlu1 %873  ;;  %v2551_v45 = vsel %vm352_vm1, %v398_v23, %v3502_v19  ;;  %v359_v23 = vrot.slane %v1943_v1, 2  ;;  %v1145_v19 = vsel %vm1131_vm2, %v2052_v46, %v2419_v31 }
  0xd9   : > { %v778_v37 = vpop.permute.xlu0 %777 }
  0xda   : > { %1047 = vrot.lane.b32.xlu1 %v2070_v52, %s1860_s8  ;;  %v1246_v54 = vsel %vm1230_vm5, %v1213_v9, %v778_v37 }
  0xdb   : > { %661 = vrot.lane.b32.xlu0 %v1987_v22, %s1856_s4  ;;  %v1279_v52 = vsel %vm1263_vm6, %v1246_v54, %v874_v60 }
  0xdc   : > { %v970_v13 = vpop.permute.xlu1 %969 }
  0xdd   : > { %v584_v21 = vpop.permute.xlu0 %583  ;;  %v1312_v3 = vsel %vm1296_vm7, %v1279_v52, %v970_v13  ;;  %v361_v52 = vrot.slane %v1955_v7, 2 }
  0xde   : > { %853 = vrot.lane.b32.xlu1 %v2466_v57, %s1857_s5  ;;  %v1179_v51 = vsel %vm1164_vm3, %v1146_v16, %v584_v21 }
  0xdf   : > { %757 = vrot.lane.b32.xlu0 %v2021_v33, %s1858_s6  ;;  %v2580_v21 = vsel %vm352_vm1, %v359_v23, %v361_v52 }
  0xe0   : > { %v1066_v37 = vpop.permute.xlu1 %1065 }
  0xe1   : > { %v680_v9 = vpop.permute.xlu0 %679  ;;  %v1345_v4 = vsel %vm1329_vm8, %v1312_v3, %v1066_v37 }
  0xe2   : > { %949 = vrot.lane.b32.xlu1 %v2008_v30, %s1859_s7  ;;  %1449 = vmatpush1.xpose.msra.mxu0 %v1345_v4  ;;  %v1212_v54 = vsel %vm1197_vm4, %v1179_v51, %v680_v9 }
  0xe3   : > { %563 = vrot.lane.b32.xlu0 %v2545_v14, %s1855_s30  ;;  %1683 = vmatpush1.xpose.msra.mxu1 %v1345_v4 }
  0xe4   : > { %v872_v60 = vpop.permute.xlu1 %871  ;;  %1612 = vmatprep.subr.msk.mxu0 %vm1131_vm2, %v2551_v45  ;;  %1652 = vmatprep.subr.msk.mxu1 %vm1131_vm2, %v2551_v45 }
  0xe5   : > { %v776_v27 = vpop.permute.xlu0 %775 }
  0xe6   : > { %1045 = vrot.lane.b32.xlu1 %v2043_v41, %s1860_s8  ;;  %v1245_v4 = vsel %vm1230_vm5, %v1212_v54, %v776_v27 }
  0xe7   : > { %659 = vrot.lane.b32.xlu0 %v1993_v24, %s1856_s4  ;;  %v1278_v56 = vsel %vm1263_vm6, %v1245_v4, %v872_v60  ;;  %v358_v4 = vrot.slane %v1940_v0, 2 }
  0xe8   : > { %v968_v13 = vpop.permute.xlu1 %967 }
  0xe9   : > { %v582_v3 = vpop.permute.xlu0 %581  ;;  %v1311_v41 = vsel %vm1296_vm7, %v1278_v56, %v968_v13  ;;  %v360_v52 = vsel %vm352_vm1, %v358_v4, %v359_v23  ;;  %v1144_v23 = vsel %vm1131_vm2, %v2058_v48, %v2421_v18 }
  0xea   : > { %851 = vrot.lane.b32.xlu1 %v2494_v39, %s1857_s5  ;;  %v1178_v16 = vsel %vm1164_vm3, %v1145_v19, %v582_v3 }
  0xeb   : > { %755 = vrot.lane.b32.xlu0 %v2026_v36, %s1858_s6 }
  0xec   : > { %v1064_v20 = vpop.permute.xlu1 %1063 }
  0xed   : > { %v678_v37 = vpop.permute.xlu0 %677  ;;  %v1344_v9 = vsel %vm1329_vm8, %v1311_v41, %v1064_v20 }
  0xee   : > { %947 = vrot.lane.b32.xlu1 %v2014_v32, %s1859_s7  ;;  %1451 = vmatpush1.xpose.msra.mxu0 %v1344_v9  ;;  %v1211_v27 = vsel %vm1197_vm4, %v1178_v16, %v678_v37 }
  0xef   : > { %561 = vrot.lane.b32.xlu0 %v2580_v21, %s1855_s30  ;;  %1684 = vmatpush1.xpose.msra.mxu1 %v1344_v9 }
  0xf0   : > { %v870_v7 = vpop.permute.xlu1 %869  ;;  %1613 = vmatprep.subr.msk.mxu0 %vm1131_vm2, %v2292_v63  ;;  %1653 = vmatprep.subr.msk.mxu1 %vm1131_vm2, %v2292_v63 }
  0xf1   : > { %v774_v60 = vpop.permute.xlu0 %773 }
  0xf2   : > { %1043 = vrot.lane.b32.xlu1 %v2048_v44, %s1860_s8  ;;  %v1244_v51 = vsel %vm1230_vm5, %v1211_v27, %v774_v60 }
  0xf3   : > { %657 = vrot.lane.b32.xlu0 %v1963_v11, %s1856_s4  ;;  %v1277_v46 = vsel %vm1263_vm6, %v1244_v51, %v870_v7  ;;  %v1143_v51 = vsel %vm1131_vm2, %v2030_v38, %v2408_v42 }
  0xf4   : > { %v966_v54 = vpop.permute.xlu1 %965 }
  0xf5   : > { %v580_v13 = vpop.permute.xlu0 %579  ;;  %v1310_v44 = vsel %vm1296_vm7, %v1277_v46, %v966_v54 }
  0xf6   : > { %849 = vrot.lane.b32.xlu1 %v2521_v49, %s1857_s5  ;;  %v1177_v37 = vsel %vm1164_vm3, %v1144_v23, %v580_v13  ;;  %v219_v23 = vld [vmem:[%s1937_s28 + $0x190] sm:$0x3] }
  0xf7   : > { %753 = vrot.lane.b32.xlu0 %v1999_v25, %s1858_s6 }
  0xf8   : > { %v1062_v31 = vpop.permute.xlu1 %1061 }
  0xf9   : > { %v676_v3 = vpop.permute.xlu0 %675  ;;  %v1343_v56 = vsel %vm1329_vm8, %v1310_v44, %v1062_v31 }
  0xfa   : > { %945 = vrot.lane.b32.xlu1 %v1987_v22, %s1859_s7  ;;  %1453 = vmatpush1.xpose.msra.mxu0 %v1343_v56  ;;  %v1210_v22 = vsel %vm1197_vm4, %v1177_v37, %v676_v3 }
  0xfb   : > { %559 = vrot.lane.b32.xlu0 %v360_v52, %s1855_s30  ;;  %1685 = vmatpush1.xpose.msra.mxu1 %v1343_v56 }
  0xfc   : > { %v868_v41 = vpop.permute.xlu1 %867  ;;  %1614 = vmatprep.subr.msk.mxu0 %vm1131_vm2, %v2314_v26  ;;  %1654 = vmatprep.subr.msk.mxu1 %vm1131_vm2, %v2314_v26 }
  0xfd   : > { %v772_v20 = vpop.permute.xlu0 %771 }
  0xfe   : > { %1041 = vrot.lane.b32.xlu1 %v2021_v33, %s1860_s8  ;;  %v1243_v9 = vsel %vm1230_vm5, %v1210_v22, %v772_v20 }
  0xff   : > { %655 = vrot.lane.b32.xlu0 %v1973_v15, %s1856_s4  ;;  %v1276_v48 = vsel %vm1263_vm6, %v1243_v9, %v868_v41  ;;  %v439_v9 = vrot.slane %v219_v23, 1 }
 0x100   : > { %v964_v7 = vpop.permute.xlu1 %963 }
 0x101   : > { %v578_v19 = vpop.permute.xlu0 %577  ;;  %v1309_v18 = vsel %vm1296_vm7, %v1276_v48, %v964_v7 }
 0x102   : > { %847 = vrot.lane.b32.xlu1 %v2545_v14, %s1857_s5  ;;  %v1176_v4 = vsel %vm1164_vm3, %v1143_v51, %v578_v19 }
 0x103   : > { %751 = vrot.lane.b32.xlu0 %v2004_v28, %s1858_s6 }
 0x104   : > { %v1060_v33 = vpop.permute.xlu1 %1059 }
 0x105   : > { %v674_v60 = vpop.permute.xlu0 %673  ;;  %v1342_v16 = vsel %vm1329_vm8, %v1309_v18, %v1060_v33  ;;  %v2705_v33 = vld [vmem:[%s1937_s28 + $0x1a0] sm:$0xff] }
 0x106   : > { %653 = vrot.lane.b32.xlu1 %v1943_v1, %s1856_s4  ;;  %1455 = vmatpush1.xpose.msra.mxu0 %v1342_v16  ;;  %v1209_v1 = vsel %vm1197_vm4, %v1176_v4, %v674_v60  ;;  %v428_v60 = vrot.slane %v2235_v8, 2  ;;  %v450_v4 = vrot.slane %v2705_v33, 1 }
 0x107   : > { %943 = vrot.lane.b32.xlu0 %v1993_v24, %s1859_s7  ;;  %1686 = vmatpush1.xpose.msra.mxu1 %v1342_v16  ;;  %v1141_v16 = vsel %vm1131_vm2, %v2008_v30, %v2398_v2  ;;  %v2731_v2 = vld [vmem:[%s1937_s28 + $0x180] sm:$0xff] }
 0x108   : > { %v866_v27 = vpop.permute.xlu1 %865  ;;  %1615 = vmatprep.subr.msk.mxu0 %vm1131_vm2, %v2278_v43  ;;  %1655 = vmatprep.subr.msk.mxu1 %vm1131_vm2, %v2278_v43 }
 0x109   : > { %v770_v54 = vpop.permute.xlu0 %769 }
 0x10a   : > { %749 = vrot.lane.b32.xlu1 %v1980_v17, %s1858_s6  ;;  %v1242_v24 = vsel %vm1230_vm5, %v1209_v1, %v770_v54 }
 0x10b   : > { %1039 = vrot.lane.b32.xlu0 %v2026_v36, %s1860_s8  ;;  %v1275_v38 = vsel %vm1263_vm6, %v1242_v24, %v866_v27  ;;  %v429_v36 = vrot.slane %v2229_v59, 2 }
 0x10c   : > { %v962_v13 = vpop.permute.xlu1 %961 }
 0x10d   : > { %v576_v46 = vpop.permute.xlu0 %575  ;;  %v1308_v42 = vsel %vm1296_vm7, %v1275_v38, %v962_v13  ;;  %v2728_v30 = vsel %vm352_vm1, %v428_v60, %v429_v36 }
 0x10e   : > { %941 = vrot.lane.b32.xlu1 %v1963_v11, %s1859_s7 }
 0x10f   : > { %845 = vrot.lane.b32.xlu0 %v2580_v21, %s1857_s5  ;;  %v431_v21 = vrot.slane %v2232_v58, 2 }
 0x110   : > { %v1058_v17 = vpop.permute.xlu1 %1057 }
 0x111   : > { %v672_v43 = vpop.permute.xlu0 %671  ;;  %v1341_v44 = vsel %vm1329_vm8, %v1308_v42, %v1058_v17  ;;  %v2679_v41 = vsel %vm352_vm1, %v429_v36, %v431_v21  ;;  %v441_v42 = vrot.slane %v2731_v2, 2 }
 0x112   : > { %1037 = vrot.lane.b32.xlu1 %v1999_v25, %s1860_s8  ;;  %1457 = vmatpush1.xpose.msra.mxu0 %v1341_v44  ;;  %v1142_v25 = vsel %vm1131_vm2, %v2036_v40, %v2413_v55 }
 0x113   : > { %651 = vrot.lane.b32.xlu0 %v1940_v0, %s1856_s4  ;;  %1687 = vmatpush1.xpose.msra.mxu1 %v1341_v44  ;;  %v1175_v0 = vsel %vm1164_vm3, %v1142_v25, %v576_v46  ;;  %v436_v44 = vrot.slane %v2731_v2, 1 }
 0x114   : > { %v864_v11 = vpop.permute.xlu1 %863  ;;  %1616 = vmatprep.subr.msk.mxu0 %vm1131_vm2, %v2302_v34  ;;  %1656 = vmatprep.subr.msk.mxu1 %vm1131_vm2, %v2302_v34  ;;  %v1208_v3 = vsel %vm1197_vm4, %v1175_v0, %v672_v43  ;;  %v2682_v34 = vld [vmem:[%s1937_s28 + $0x188] sm:$0xff]  ;;  %v2753_v0 = vld [vmem:[%s1937_s28 + $0x198] sm:$0xff] }
 0x115   : > { %v768_v31 = vpop.permute.xlu0 %767  ;;  %v437_v22 = vrot.slane %v2682_v34, 1 }
 0x116   : > { %843 = vrot.lane.b32.xlu1 %v360_v52, %s1857_s5  ;;  %v1241_v58 = vsel %vm1230_vm5, %v1208_v3, %v768_v31  ;;  %v444_v52 = vrot.slane %v219_v23, 2  ;;  %v424_v3 = vrot.slane %v2207_v61, 2 }
 0x117   : > { %747 = vrot.lane.b32.xlu0 %v1966_v12, %s1858_s6  ;;  %v1274_v55 = vsel %vm1263_vm6, %v1241_v58, %v864_v11  ;;  %v442_v12 = vrot.slane %v2682_v34, 2  ;;  %v2702_v18 = vsel %vm271_vm0, %v437_v22, %v439_v9  ;;  %v2750_v31 = vsel %vm271_vm0, %v436_v44, %v437_v22  ;;  %v3505_v44 = vld [vmem:[#allocation14_spill] sm:$0xff] }
 0x118   : > { %v960_v56 = vpop.permute.xlu1 %959  ;;  %v426_v58 = vrot.slane %v2210_v35, 2  ;;  %v449_v35 = vrot.slane %v2753_v0, 1 }
 0x119   : > { %v574_v40 = vpop.permute.xlu0 %573  ;;  %v1307_v20 = vsel %vm1296_vm7, %v1274_v55, %v960_v56  ;;  %v2747_v21 = vsel %vm352_vm1, %v441_v42, %v442_v12  ;;  %v1140_v56 = vsel %vm1131_vm2, %v2014_v32, %v2402_v50 }
 0x11a   : > { %939 = vrot.lane.b32.xlu1 %v1973_v15, %s1859_s7  ;;  %v2699_v15 = vsel %vm352_vm1, %v442_v12, %v444_v52  ;;  %v1174_v51 = vsel %vm1164_vm3, %v1141_v16, %v574_v40  ;;  %v2773_v52 = vsel %vm352_vm1, %v424_v3, %v426_v58  ;;  %v1766_v16 = vld [vmem:[%s1937_s28 + $0x50] sm:$0xff] }
 0x11b   : > { %617 = vrot.lane.b32.xlu0 %v2679_v41, %s1855_s30 }
 0x11c   : > { %v1056_v37 = vpop.permute.xlu1 %1055 }
 0x11d   : > { %v670_v7 = vpop.permute.xlu0 %669  ;;  %v1340_v19 = vsel %vm1329_vm8, %v1307_v20, %v1056_v37  ;;  %v451_v20 = vsel %vm271_vm0, %v449_v35, %v450_v4 }
 0x11e   : > { %1035 = vrot.lane.b32.xlu1 %v2004_v28, %s1860_s8  ;;  %1459 = vmatpush1.xpose.msra.mxu0 %v1340_v19  ;;  %v2713_v28 = vld [vmem:[%s1937_s28 + $0x1a8] sm:$0x3]  ;;  %v1207_v54 = vsel %vm1197_vm4, %v1174_v51, %v670_v7 }
 0x11f   : > { %713 = vrot.lane.b32.xlu0 %v2682_v34, %s1856_s4  ;;  %1688 = vmatpush1.xpose.msra.mxu1 %v1340_v19 }
 0x120   : > { %v862_v48 = vpop.permute.xlu1 %861  ;;  %1617 = vmatprep.subr.msk.mxu0 %vm1131_vm2, %v2323_v5  ;;  %1657 = vmatprep.subr.msk.mxu1 %vm1131_vm2, %v2323_v5  ;;  %v452_v5 = vrot.slane %v2713_v28, 1 }
 0x121   : > { %v766_v27 = vpop.permute.xlu0 %765 }
 0x122   : > { %905 = vrot.lane.b32.xlu1 %v2699_v15, %s1857_s5  ;;  %v1240_v1 = vsel %vm1230_vm5, %v1207_v54, %v766_v27  ;;  %v453_v38 = vsel %vm271_vm0, %v450_v4, %v452_v5  ;;  %v1139_v27 = vsel %vm1131_vm2, %v1766_v16, %v2390_v47 }
 0x123   : > { %809 = vrot.lane.b32.xlu0 %v2702_v18, %s1858_s6  ;;  %v1273_v46 = vsel %vm1263_vm6, %v1240_v1, %v862_v48  ;;  %v3503_v48 = vld [vmem:[#allocation18_spill] sm:$0xff] }
 0x124   : > { %v958_v24 = vpop.permute.xlu1 %957  ;;  %v423_v60 = vrot.slane %v3503_v48, 2 }
 0x125   : > { %v572_v13 = vpop.permute.xlu0 %571  ;;  %v1306_v17 = vsel %vm1296_vm7, %v1273_v46, %v958_v24 }
 0x126   : > { %1001 = vrot.lane.b32.xlu1 %v2705_v33, %s1859_s7  ;;  %v1173_v40 = vsel %vm1164_vm3, %v1140_v56, %v572_v13  ;;  %v3506_v56 = vld [vmem:[#allocation23_spill] sm:$0xff] }
 0x127   : > { %615 = vrot.lane.b32.xlu0 %v2728_v30, %s1855_s30 }
 0x128   : > { %v1054_v43 = vpop.permute.xlu1 %1053 }
 0x129   : > { %v668_v11 = vpop.permute.xlu0 %667  ;;  %v1339_v36 = vsel %vm1329_vm8, %v1306_v17, %v1054_v43  ;;  %v3504_v17 = vld [vmem:[#allocation13_spill] sm:$0xff] }
 0x12a   : > { %1097 = vrot.lane.b32.xlu1 %v453_v38, %s1860_s8  ;;  %1461 = vmatpush1.xpose.msra.mxu0 %v1339_v36  ;;  %v1206_v55 = vsel %vm1197_vm4, %v1173_v40, %v668_v11  ;;  %v419_v43 = vrot.slane %v3504_v17, 2  ;;  %v421_v11 = vrot.slane %v3505_v44, 2  ;;  %v3514_v44 = vld [vmem:[#allocation30_spill] sm:$0xff] }
 0x12b   : > { %711 = vrot.lane.b32.xlu0 %v2731_v2, %s1856_s4  ;;  %1689 = vmatpush1.xpose.msra.mxu1 %v1339_v36  ;;  %v1767_v36 = vld [vmem:[%s1937_s28 + $0x48] sm:$0xff] }
 0x12c   : > { %v860_v25 = vpop.permute.xlu1 %859  ;;  %1618 = vmatprep.subr.msk.mxu0 %vm1131_vm2, %v2339_v10  ;;  %1658 = vmatprep.subr.msk.mxu1 %vm1131_vm2, %v2339_v10 }
 0x12d   : > { %v764_v23 = vpop.permute.xlu0 %763 }
 0x12e   : > { %903 = vrot.lane.b32.xlu1 %v2747_v21, %s1857_s5  ;;  %v1239_v12 = vsel %vm1230_vm5, %v1206_v55, %v764_v23 }
 0x12f   : > { %807 = vrot.lane.b32.xlu0 %v2750_v31, %s1858_s6  ;;  %v1272_v50 = vsel %vm1263_vm6, %v1239_v12, %v860_v25 }
 0x130   : > { %v956_v10 = vpop.permute.xlu1 %955 }
 0x131   : > { %v570_v32 = vpop.permute.xlu0 %569  ;;  %v1305_v37 = vsel %vm1296_vm7, %v1272_v50, %v956_v10  ;;  %v3507_v50 = vld [vmem:[#allocation15_spill] sm:$0xff] }
 0x132   : > { %999 = vrot.lane.b32.xlu1 %v2753_v0, %s1859_s7  ;;  %v1172_v54 = vsel %vm1164_vm3, %v1139_v27, %v570_v32 }
 0x133   : > { %613 = vrot.lane.b32.xlu0 %v2773_v52, %s1855_s30 }
 0x134   : > { %v1052_v22 = vpop.permute.xlu1 %1051 }
 0x135   : > { %v666_v9 = vpop.permute.xlu0 %665  ;;  %v1338_v7 = vsel %vm1329_vm8, %v1305_v37, %v1052_v22  ;;  %v3508_v37 = vld [vmem:[#allocation31_spill] sm:$0xff]  ;;  %v1768_v22 = vld [vmem:[%s1937_s28 + $0x38] sm:$0xff] }
 0x136   : > { %1095 = vrot.lane.b32.xlu1 %v451_v20, %s1860_s8  ;;  %1463 = vmatpush1.xpose.msra.mxu0 %v1338_v7  ;;  %v1205_v4 = vsel %vm1197_vm4, %v1172_v54, %v666_v9  ;;  %v418_v20 = vrot.slane %v3507_v50, 2  ;;  %v3509_v9 = vld [vmem:[#allocation29_spill] sm:$0xff]  ;;  %v3516_v50 = vld [vmem:[#allocation27_spill] sm:$0xff] }
 0x137   : > { %709 = vrot.lane.b32.xlu0 %v2229_v59, %s1856_s4  ;;  %1690 = vmatpush1.xpose.msra.mxu1 %v1338_v7  ;;  %v1137_v7 = vsel %vm1131_vm2, %v1768_v22, %v3509_v9  ;;  %v3517_v22 = vld [vmem:[#allocation19_spill] sm:$0xff] }
 0x138   : > { %v858_v19 = vpop.permute.xlu1 %857  ;;  %1619 = vmatprep.subr.msk.mxu0 %vm1131_vm2, %v2356_v62  ;;  %1659 = vmatprep.subr.msk.mxu1 %vm1131_vm2, %v2356_v62  ;;  %v2802_v62 = vsel %vm352_vm1, %v423_v60, %v424_v3  ;;  %v3510_v60 = vld [vmem:[#allocation21_spill] sm:$0xff] }
 0x139   : > { %v762_v51 = vpop.permute.xlu0 %761 }
 0x13a   : > { %901 = vrot.lane.b32.xlu1 %v2679_v41, %s1857_s5  ;;  %v1238_v5 = vsel %vm1230_vm5, %v1205_v4, %v762_v51  ;;  %v2861_v51 = vsel %vm352_vm1, %v418_v20, %v419_v43 }
 0x13b   : > { %805 = vrot.lane.b32.xlu0 %v2255_v29, %s1858_s6  ;;  %v1271_v47 = vsel %vm1263_vm6, %v1238_v5, %v858_v19 }
 0x13c   : > { %v954_v1 = vpop.permute.xlu1 %953 }
 0x13d   : > { %v568_v24 = vpop.permute.xlu0 %567  ;;  %v1304_v13 = vsel %vm1296_vm7, %v1271_v47, %v954_v1 }
 0x13e   : > { %997 = vrot.lane.b32.xlu1 %v2682_v34, %s1859_s7 }
 0x13f   : > { %611 = vrot.lane.b32.xlu0 %v2802_v62, %s1855_s30 }
 0x140   : > { %v1050_v46 = vpop.permute.xlu1 %1049 }
 0x141   : > { %v664_v38 = vpop.permute.xlu0 %663  ;;  %v1337_v42 = vsel %vm1329_vm8, %v1304_v13, %v1050_v46  ;;  %v3511_v13 = vld [vmem:[#allocation9_spill] sm:$0xff] }
 0x142   : > { %1093 = vrot.lane.b32.xlu1 %v2702_v18, %s1860_s8  ;;  %1465 = vmatpush1.xpose.msra.mxu0 %v1337_v42  ;;  %v1138_v18 = vsel %vm1131_vm2, %v1767_v36, %v2392_v53  ;;  %v414_v46 = vrot.slane %v3511_v13, 2 }
 0x143   : > { %707 = vrot.lane.b32.xlu0 %v2235_v8, %s1856_s4  ;;  %1691 = vmatpush1.xpose.msra.mxu1 %v1337_v42  ;;  %v1171_v3 = vsel %vm1164_vm3, %v1138_v18, %v568_v24  ;;  %v3515_v18 = vld [vmem:[#allocation22_spill] sm:$0xff] }
 0x144   : > { %v856_v34 = vpop.permute.xlu1 %855  ;;  %1620 = vmatprep.subr.msk.mxu0 %vm1131_vm2, %v2382_v6  ;;  %1660 = vmatprep.subr.msk.mxu1 %vm1131_vm2, %v2382_v6  ;;  %v1204_v58 = vsel %vm1197_vm4, %v1171_v3, %v664_v38  ;;  %v2832_v6 = vsel %vm352_vm1, %v419_v43, %v421_v11  ;;  %v3512_v38 = vld [vmem:[#allocation10_spill] sm:$0xff]  ;;  %v1769_v43 = vld [vmem:[%s1937_s28 + $0x30] sm:$0xff] }
 0x145   : > { %v760_v25 = vpop.permute.xlu0 %759  ;;  %v416_v42 = vrot.slane %v3512_v38, 2  ;;  %v3518_v38 = vld [vmem:[#allocation25_spill] sm:$0xff] }
 0x146   : > { %899 = vrot.lane.b32.xlu1 %v2728_v30, %s1857_s5  ;;  %v1237_v23 = vsel %vm1230_vm5, %v1204_v58, %v760_v25 }
 0x147   : > { %803 = vrot.lane.b32.xlu0 %v3506_v56, %s1858_s6  ;;  %v1270_v53 = vsel %vm1263_vm6, %v1237_v23, %v856_v34  ;;  %v3513_v34 = vld [vmem:[#allocation33_spill] sm:$0xff]  ;;  %v2891_v58 = vsel %vm352_vm1, %v414_v46, %v416_v42 }
 0x148   : > { %v952_v40 = vpop.permute.xlu1 %951 }
 0x149   : > { %v566_v55 = vpop.permute.xlu0 %565  ;;  %v1303_v35 = vsel %vm1296_vm7, %v1270_v53, %v952_v40 }
 0x14a   : > { %995 = vrot.lane.b32.xlu1 %v2731_v2, %s1859_s7 }
 0x14b   : > { %609 = vrot.lane.b32.xlu0 %v2832_v6, %s1855_s30 }
 0x14c   : > { %v1048_v12 = vpop.permute.xlu1 %1047 }
 0x14d   : > { %v662_v10 = vpop.permute.xlu0 %661  ;;  %v1336_v32 = vsel %vm1329_vm8, %v1303_v35, %v1048_v12 }
 0x14e   : > { %1091 = vrot.lane.b32.xlu1 %v2750_v31, %s1860_s8  ;;  %1467 = vmatpush1.xpose.msra.mxu0 %v1336_v32  ;;  %v1170_v31 = vsel %vm1164_vm3, %v1137_v7, %v566_v55 }
 0x14f   : > { %705 = vrot.lane.b32.xlu0 %v2207_v61, %s1856_s4  ;;  %1692 = vmatpush1.xpose.msra.mxu1 %v1336_v32  ;;  %v1203_v61 = vsel %vm1197_vm4, %v1170_v31, %v662_v10  ;;  %v2905_v10 = vld [vmem:[%s1937_s28 + $0x120] sm:$0xff]  ;;  %v2926_v31 = vld [vmem:[%s1937_s28 + $0x158] sm:$0xff] }
 0x150   : > { %v854_v2 = vpop.permute.xlu1 %853  ;;  %1621 = vmatprep.subr.msk.mxu0 %vm1131_vm2, %v3508_v37  ;;  %1661 = vmatprep.subr.msk.mxu1 %vm1131_vm2, %v3508_v37  ;;  %v413_v32 = vrot.slane %v2905_v10, 2 }
 0x151   : > { %v758_v19 = vpop.permute.xlu0 %757 }
 0x152   : > { %897 = vrot.lane.b32.xlu1 %v2773_v52, %s1857_s5  ;;  %v1236_v16 = vsel %vm1230_vm5, %v1203_v61, %v758_v19 }
 0x153   : > { %801 = vrot.lane.b32.xlu0 %v3510_v60, %s1858_s6  ;;  %v1269_v4 = vsel %vm1263_vm6, %v1236_v16, %v854_v2  ;;  %v1771_v2 = vld [vmem:[%s1937_s28 + $0x20] sm:$0xff] }
 0x154   : > { %v950_v27 = vpop.permute.xlu1 %949 }
 0x155   : > { %v564_v54 = vpop.permute.xlu0 %563  ;;  %v1302_v5 = vsel %vm1296_vm7, %v1269_v4, %v950_v27 }
 0x156   : > { %993 = vrot.lane.b32.xlu1 %v2229_v59, %s1859_s7 }
 0x157   : > { %607 = vrot.lane.b32.xlu0 %v2861_v51, %s1855_s30 }
 0x158   : > { %v1046_v1 = vpop.permute.xlu1 %1045 }
 0x159   : > { %v660_v24 = vpop.permute.xlu0 %659  ;;  %v1335_v47 = vsel %vm1329_vm8, %v1302_v5, %v1046_v1  ;;  %v2938_v5 = vld [vmem:[%s1937_s28 + $0x138] sm:$0xff] }
 0x15a   : > { %1089 = vrot.lane.b32.xlu1 %v2255_v29, %s1860_s8  ;;  %1469 = vmatpush1.xpose.msra.mxu0 %v1335_v47  ;;  %v1136_v29 = vsel %vm1131_vm2, %v1769_v43, %v3514_v44  ;;  %v3519_v43 = vld [vmem:[#allocation20_spill] sm:$0xff] }
 0x15b   : > { %703 = vrot.lane.b32.xlu0 %v3503_v48, %s1856_s4  ;;  %1693 = vmatpush1.xpose.msra.mxu1 %v1335_v47  ;;  %v1169_v36 = vsel %vm1164_vm3, %v1136_v29, %v564_v54 }
 0x15c   : > { %v852_v59 = vpop.permute.xlu1 %851  ;;  %1622 = vmatprep.subr.msk.mxu0 %vm1131_vm2, %v3513_v34  ;;  %1662 = vmatprep.subr.msk.mxu1 %vm1131_vm2, %v3513_v34  ;;  %v1202_v48 = vsel %vm1197_vm4, %v1169_v36, %v660_v24  ;;  %v2943_v24 = vld [vmem:[%s1937_s28 + $0x110] sm:$0xff] }
 0x15d   : > { %v756_v11 = vpop.permute.xlu0 %755  ;;  %v409_v47 = vrot.slane %v2943_v24, 2 }
 0x15e   : > { %895 = vrot.lane.b32.xlu1 %v2802_v62, %s1857_s5  ;;  %v1235_v25 = vsel %vm1230_vm5, %v1202_v48, %v756_v11  ;;  %v2965_v48 = vld [vmem:[%s1937_s28 + $0x150] sm:$0xff] }
 0x15f   : > { %799 = vrot.lane.b32.xlu0 %v3515_v18, %s1858_s6  ;;  %v1268_v40 = vsel %vm1263_vm6, %v1235_v25, %v852_v59  ;;  %v1775_v59 = vld [vmem:[%s1937_s28 + $0x118] sm:$0x3] }
 0x160   : > { %v948_v3 = vpop.permute.xlu1 %947  ;;  %v411_v13 = vrot.slane %v1775_v59, 2 }
 0x161   : > { %v562_v23 = vpop.permute.xlu0 %561  ;;  %v1301_v55 = vsel %vm1296_vm7, %v1268_v40, %v948_v3 }
 0x162   : > { %991 = vrot.lane.b32.xlu1 %v2235_v8, %s1859_s7 }
 0x163   : > { %605 = vrot.lane.b32.xlu0 %v2891_v58, %s1855_s30 }
 0x164   : > { %v1044_v53 = vpop.permute.xlu1 %1043 }
 0x165   : > { %v658_v35 = vpop.permute.xlu0 %657  ;;  %v1334_v12 = vsel %vm1329_vm8, %v1301_v55, %v1044_v53  ;;  %v1778_v55 = vld [vmem:[%s1937_s28 + $0x8] sm:$0xff]  ;;  %v3520_v53 = vld [vmem:[#allocation28_spill] sm:$0xff] }
 0x166   : > { %1087 = vrot.lane.b32.xlu1 %v3506_v56, %s1860_s8  ;;  %1471 = vmatpush1.xpose.msra.mxu0 %v1334_v12  ;;  %v1135_v56 = vsel %vm1131_vm2, %v1771_v2, %v3516_v50  ;;  %v2982_v2 = vld [vmem:[%s1937_s28 + $0x128] sm:$0xff] }
 0x167   : > { %701 = vrot.lane.b32.xlu0 %v3504_v17, %s1856_s4  ;;  %1694 = vmatpush1.xpose.msra.mxu1 %v1334_v12  ;;  %v1168_v17 = vsel %vm1164_vm3, %v1135_v56, %v562_v23 }
 0x168   : > { %v850_v8 = vpop.permute.xlu1 %849  ;;  %1623 = vmatprep.subr.msk.mxu0 %vm1131_vm2, %v2466_v57  ;;  %1663 = vmatprep.subr.msk.mxu1 %vm1131_vm2, %v2466_v57  ;;  %v1201_v37 = vsel %vm1197_vm4, %v1168_v17, %v658_v35  ;;  %v2923_v57 = vsel %vm352_vm1, %v413_v32, %v414_v46  ;;  %v1776_v46 = vld [vmem:[%s1937_s28 + $0x18] sm:$0xff]  ;;  %v1133_v35 = vsel %vm1131_vm2, %v1778_v55, %v3520_v53 }
 0x169   : > { %v754_v20 = vpop.permute.xlu0 %753  ;;  %v1134_v42 = vsel %vm1131_vm2, %v1776_v46, %v3518_v38 }
 0x16a   : > { %893 = vrot.lane.b32.xlu1 %v2832_v6, %s1857_s5  ;;  %v1234_v9 = vsel %vm1230_vm5, %v1201_v37, %v754_v20 }
 0x16b   : > { %797 = vrot.lane.b32.xlu0 %v3517_v22, %s1858_s6  ;;  %v1267_v61 = vsel %vm1263_vm6, %v1234_v9, %v850_v8  ;;  %v3521_v8 = vld [vmem:[#allocation49_spill] sm:$0xff] }
 0x16c   : > { %v946_v7 = vpop.permute.xlu1 %945  ;;  %v1166_v32 = vsel %vm1164_vm3, %v1133_v35, %v3521_v8  ;;  %v1785_v8 = vld [vmem:[%s1937_s28 + $0x170] sm:$0xff] }
 0x16d   : > { %v560_v19 = vpop.permute.xlu0 %559  ;;  %v1300_v16 = vsel %vm1296_vm7, %v1267_v61, %v946_v7  ;;  %v3522_v7 = vld [vmem:[#allocation16_spill] sm:$0xff] }
 0x16e   : > { %989 = vrot.lane.b32.xlu1 %v2926_v31, %s1859_s7  ;;  %v1167_v34 = vsel %vm1164_vm3, %v1134_v42, %v560_v19 }
 0x16f   : > { %603 = vrot.lane.b32.xlu0 %v2923_v57, %s1855_s30 }
 0x170   : > { %v1042_v27 = vpop.permute.xlu1 %1041 }
 0x171   : > { %v656_v54 = vpop.permute.xlu0 %655  ;;  %v1333_v4 = vsel %vm1329_vm8, %v1300_v16, %v1042_v27 }
 0x172   : > { %1085 = vrot.lane.b32.xlu1 %v3510_v60, %s1860_s8  ;;  %1473 = vmatpush1.xpose.msra.mxu0 %v1333_v4  ;;  %v1200_v44 = vsel %vm1197_vm4, %v1167_v34, %v656_v54 }
 0x173   : > { %699 = vrot.lane.b32.xlu0 %v2938_v5, %s1856_s4  ;;  %1695 = vmatpush1.xpose.msra.mxu1 %v1333_v4  ;;  %v3007_v4 = vld [vmem:[%s1937_s28 + $0x140] sm:$0xff] }
 0x174   : > { %v848_v1 = vpop.permute.xlu1 %847  ;;  %1624 = vmatprep.subr.msk.mxu0 %vm1131_vm2, %v2494_v39  ;;  %1664 = vmatprep.subr.msk.mxu1 %vm1131_vm2, %v2494_v39  ;;  %v2961_v39 = vsel %vm352_vm1, %v409_v47, %v411_v13 }
 0x175   : > { %v752_v60 = vpop.permute.xlu0 %751 }
 0x176   : > { %891 = vrot.lane.b32.xlu1 %v2861_v51, %s1857_s5  ;;  %v1233_v11 = vsel %vm1230_vm5, %v1200_v44, %v752_v60  ;;  %v3524_v60 = vld [vmem:[#allocation50_spill] sm:$0xff] }
 0x177   : > { %795 = vrot.lane.b32.xlu0 %v3519_v43, %s1858_s6  ;;  %v1266_v25 = vsel %vm1263_vm6, %v1233_v11, %v848_v1  ;;  %v1782_v1 = vld [vmem:[%s1937_s28] sm:$0xff] }
 0x178   : > { %v654_v29 = vpop.permute.xlu1 %653 }
 0x179   : > { %v944_v36 = vpop.permute.xlu0 %943  ;;  %v1199_v50 = vsel %vm1197_vm4, %v1166_v32, %v654_v29  ;;  %v1784_v29 = vld [vmem:[%s1937_s28 + $0x100] sm:$0x3]  ;;  %v3526_v32 = vld [vmem:[#allocation47_spill] sm:$0xff] }
 0x17a   : > { %987 = vrot.lane.b32.xlu1 %v2965_v48, %s1859_s7  ;;  %v1299_v23 = vsel %vm1296_vm7, %v1266_v25, %v944_v36  ;;  %v406_v11 = vrot.slane %v1784_v29, 2  ;;  %v455_v36 = vrot.slane %v2705_v33, 2 }
 0x17b   : > { %601 = vrot.lane.b32.xlu0 %v2961_v39, %s1855_s30 }
 0x17c   : > { %v750_v3 = vpop.permute.xlu1 %749 }
 0x17d   : > { %v1040_v40 = vpop.permute.xlu0 %1039  ;;  %v1232_v17 = vsel %vm1230_vm5, %v1199_v50, %v750_v3  ;;  %v457_v3 = vrot.slane %v2713_v28, 2  ;;  %v1163_v50 = vsel %vm1131_vm2, %v1785_v8, %v3526_v32  ;;  %v3531_v8 = vld [vmem:[#allocation45_spill] sm:$0xff] }
 0x17e   : > { %1083 = vrot.lane.b32.xlu1 %v3515_v18, %s1860_s8  ;;  %v1332_v12 = vsel %vm1329_vm8, %v1299_v23, %v1040_v40  ;;  %v2990_v18 = vld [vmem:[%s1937_s28 + $0x108] sm:$0xff]  ;;  %v3525_v23 = vld [vmem:[#allocation17_spill] sm:$0xff]  ;;  %v1161_v32 = vsel %vm1131_vm2, %v2926_v31, %v3531_v8  ;;  %v3532_v31 = vld [vmem:[#allocation7_spill] sm:$0xff] }
 0x17f   : > { %697 = vrot.lane.b32.xlu0 %v2982_v2, %s1856_s4  ;;  %1475 = vmatpush1.xpose.msra.mxu0 %v1332_v12  ;;  %v408_v20 = vrot.slane %v2990_v18, 2  ;;  %v458_v28 = vsel %vm352_vm1, %v455_v36, %v457_v3 }
 0x180   : > { %1696 = vmatpush1.xpose.msra.mxu1 %v1332_v12  ;;  %v942_v56 = vpop.permute.xlu1 %941  ;;  %1625 = vmatprep.subr.msk.mxu0 %vm1131_vm2, %v2521_v49 }
 0x181   : > { %v846_v37 = vpop.permute.xlu0 %845  ;;  %1665 = vmatprep.subr.msk.mxu1 %vm1131_vm2, %v2521_v49  ;;  %v3002_v61 = vsel %vm352_vm1, %v408_v20, %v409_v47  ;;  %v3523_v47 = vld [vmem:[#allocation26_spill] sm:$0xff] }
 0x182   : > { %v1265_v9 = vsel %vm1263_vm6, %v1232_v17, %v846_v37  ;;  %889 = vrot.lane.b32.xlu1 %v2891_v58, %s1857_s5  ;;  %v1132_v59 = vsel %vm1131_vm2, %v1782_v1, %v3523_v47 }
 0x183   : > { %793 = vrot.lane.b32.xlu0 %v3522_v7, %s1858_s6  ;;  %v1298_v16 = vsel %vm1296_vm7, %v1265_v9, %v942_v56  ;;  %v1165_v46 = vsel %vm1164_vm3, %v1132_v59, %v3524_v60 }
 0x184   : > { %v1038_v19 = vpop.permute.xlu1 %1037 }
 0x185   : > { %v652_v27 = vpop.permute.xlu0 %651  ;;  %v1331_v54 = vsel %vm1329_vm8, %v1298_v16, %v1038_v19  ;;  %v3063_v19 = vld [vmem:[%s1937_s28 + $0xf0] sm:$0xff] }
 0x186   : > { %985 = vrot.lane.b32.xlu1 %v3007_v4, %s1859_s7  ;;  %1477 = vmatpush1.xpose.msra.mxu0 %v1331_v54  ;;  %v1198_v38 = vsel %vm1197_vm4, %v1165_v46, %v652_v27  ;;  %v403_v16 = vrot.slane %v3063_v19, 2  ;;  %v454_v27 = vrot.slane %v2753_v0, 2 }
 0x187   : > { %599 = vrot.lane.b32.xlu0 %v3002_v61, %s1855_s30  ;;  %1697 = vmatpush1.xpose.msra.mxu1 %v1331_v54 }
 0x188   : > { %v844_v49 = vpop.permute.xlu1 %843  ;;  %1626 = vmatprep.subr.msk.mxu0 %vm1131_vm2, %v2545_v14  ;;  %1666 = vmatprep.subr.msk.mxu1 %vm1131_vm2, %v2545_v14  ;;  %v3029_v14 = vld [vmem:[%s1937_s28 + $0xf8] sm:$0xff]  ;;  %v456_v0 = vsel %vm352_vm1, %v454_v27, %v455_v36 }
 0x189   : > { %v748_v13 = vpop.permute.xlu0 %747  ;;  %v404_v44 = vrot.slane %v3029_v14, 2 }
 0x18a   : > { %1081 = vrot.lane.b32.xlu1 %v3517_v22, %s1860_s8  ;;  %v1231_v42 = vsel %vm1230_vm5, %v1198_v38, %v748_v13  ;;  %v1787_v38 = vld [vmem:[%s1937_s28 + $0x168] sm:$0xff] }
 0x18b   : > { %695 = vrot.lane.b32.xlu0 %v2905_v10, %s1856_s4  ;;  %v1264_v22 = vsel %vm1263_vm6, %v1231_v42, %v844_v49  ;;  %v3042_v53 = vsel %vm352_vm1, %v404_v44, %v406_v11  ;;  %v3527_v49 = vld [vmem:[#allocation11_spill] sm:$0xff]  ;;  %v3074_v59 = vsel %vm352_vm1, %v403_v16, %v404_v44  ;;  %v3528_v42 = vld [vmem:[#allocation48_spill] sm:$0xff] }
 0x18c   : > { %v940_v34 = vpop.permute.xlu1 %939 }
 0x18d   : > { %v618_v25 = vpop.permute.xlu0 %617  ;;  %v1297_v40 = vsel %vm1296_vm7, %v1264_v22, %v940_v34  ;;  %v1162_v34 = vsel %vm1131_vm2, %v1787_v38, %v3528_v42 }
 0x18e   : > { %887 = vrot.lane.b32.xlu1 %v2923_v57, %s1857_s5  ;;  %v1196_v20 = vsel %vm1164_vm3, %v1163_v50, %v618_v25 }
 0x18f   : > { %791 = vrot.lane.b32.xlu0 %v3525_v23, %s1858_s6 }
 0x190   : > { %v1036_v55 = vpop.permute.xlu1 %1035 }
 0x191   : > { %v714_v35 = vpop.permute.xlu0 %713  ;;  %v1330_v33 = vsel %vm1329_vm8, %v1297_v40, %v1036_v55  ;;  %v3529_v40 = vld [vmem:[#allocation12_spill] sm:$0xff] }
 0x192   : > { %983 = vrot.lane.b32.xlu1 %v2938_v5, %s1859_s7  ;;  %1479 = vmatpush1.xpose.msra.mxu0 %v1330_v33  ;;  %v1229_v17 = vsel %vm1197_vm4, %v1196_v20, %v714_v35 }
 0x193   : > { %597 = vrot.lane.b32.xlu0 %v3042_v53, %s1855_s30  ;;  %1698 = vmatpush1.xpose.msra.mxu1 %v1330_v33 }
 0x194   : > { %v906_v12 = vpop.permute.xlu1 %905  ;;  %1627 = vmatprep.subr.msk.mxu0 %vm1131_vm2, %v458_v28  ;;  %1667 = vmatprep.subr.msk.mxu1 %vm1131_vm2, %v458_v28  ;;  %v3530_v28 = vld [vmem:[#allocation24_spill] sm:$0xff] }
 0x195   : > { %v810_v56 = vpop.permute.xlu0 %809 }
 0x196   : > { %1079 = vrot.lane.b32.xlu1 %v3519_v43, %s1860_s8  ;;  %v1262_v37 = vsel %vm1230_vm5, %v1229_v17, %v810_v56 }
 0x197   : > { %693 = vrot.lane.b32.xlu0 %v2943_v24, %s1856_s4  ;;  %v1295_v43 = vsel %vm1263_vm6, %v1262_v37, %v906_v12 }
 0x198   : > { %v1002_v9 = vpop.permute.xlu1 %1001 }
 0x199   : > { %v616_v54 = vpop.permute.xlu0 %615  ;;  %v1328_v1 = vsel %vm1296_vm7, %v1295_v43, %v1002_v9 }
 0x19a   : > { %885 = vrot.lane.b32.xlu1 %v2961_v39, %s1857_s5  ;;  %v1195_v29 = vsel %vm1164_vm3, %v1162_v34, %v616_v54 }
 0x19b   : > { %789 = vrot.lane.b32.xlu0 %v3527_v49, %s1858_s6 }
 0x19c   : > { %v1098_v47 = vpop.permute.xlu1 %1097 }
 0x19d   : > { %v712_v13 = vpop.permute.xlu0 %711  ;;  %v1361_v60 = vsel %vm1329_vm8, %v1328_v1, %v1098_v47  ;;  %v3533_v1 = vld [vmem:[#allocation46_spill] sm:$0xff] }
 0x19e   : > { %981 = vrot.lane.b32.xlu1 %v2982_v2, %s1859_s7  ;;  %1481 = vmatpush2.xpose.msra.mxu0 %v1361_v60  ;;  %v1228_v11 = vsel %vm1197_vm4, %v1195_v29, %v712_v13  ;;  %v1160_v47 = vsel %vm1131_vm2, %v2965_v48, %v3533_v1  ;;  %v3534_v48 = vld [vmem:[#allocation8_spill] sm:$0xff] }
 0x19f   : > { %595 = vrot.lane.b32.xlu0 %v3074_v59, %s1855_s30  ;;  %1699 = vmatpush2.xpose.msra.mxu1 %v1361_v60 }
 0x1a0   : > { %v904_v46 = vpop.permute.xlu1 %903  ;;  %1628 = vmatprep.subr.msk.mxu0 %vm1131_vm2, %v456_v0  ;;  %1668 = vmatprep.subr.msk.mxu1 %vm1131_vm2, %v456_v0 }
 0x1a1   : > { %v808_v44 = vpop.permute.xlu0 %807 }
 0x1a2   : > { %1077 = vrot.lane.b32.xlu1 %v3522_v7, %s1860_s8  ;;  %v1261_v36 = vsel %vm1230_vm5, %v1228_v11, %v808_v44 }
 0x1a3   : > { %691 = vrot.lane.b32.xlu0 %v2990_v18, %s1856_s4  ;;  %v1294_v22 = vsel %vm1263_vm6, %v1261_v36, %v904_v46  ;;  %v3535_v36 = vld [vmem:[#allocation43_spill] sm:$0xff] }
 0x1a4   : > { %v1000_v25 = vpop.permute.xlu1 %999 }
 0x1a5   : > { %v614_v3 = vpop.permute.xlu0 %613  ;;  %v1327_v55 = vsel %vm1296_vm7, %v1294_v22, %v1000_v25  ;;  %v1159_v25 = vsel %vm1131_vm2, %v3007_v4, %v3535_v36 }
 0x1a6   : > { %883 = vrot.lane.b32.xlu1 %v3002_v61, %s1857_s5  ;;  %v1194_v56 = vsel %vm1164_vm3, %v1161_v32, %v614_v3 }
 0x1a7   : > { %787 = vrot.lane.b32.xlu0 %v3529_v40, %s1858_s6 }
 0x1a8   : > { %v1096_v7 = vpop.permute.xlu1 %1095 }
 0x1a9   : > { %v710_v35 = vpop.permute.xlu0 %709  ;;  %v1360_v33 = vsel %vm1329_vm8, %v1327_v55, %v1096_v7  ;;  %v3167_v55 = vld [vmem:[%s1937_s28 + $0xe0] sm:$0xff] }
 0x1aa   : > { %979 = vrot.lane.b32.xlu1 %v2905_v10, %s1859_s7  ;;  %1483 = vmatpush2.xpose.msra.mxu0 %v1360_v33  ;;  %v1227_v20 = vsel %vm1197_vm4, %v1194_v56, %v710_v35  ;;  %v1365_v56 = vld [vmem:[%s3412_s1 + $0x18] sm:$0xff] }
 0x1ab   : > { %593 = vrot.lane.b32.xlu0 %v3530_v28, %s1855_s30  ;;  %1700 = vmatpush2.xpose.msra.mxu1 %v1360_v33  ;;  %v3536_v33 = vld [vmem:[#allocation5_spill] sm:$0xff] }
 0x1ac   : > { %v902_v12 = vpop.permute.xlu1 %901  ;;  %1629 = vmatprep.subr.msk.mxu0 %vm1131_vm2, %v2699_v15  ;;  %1669 = vmatprep.subr.msk.mxu1 %vm1131_vm2, %v2699_v15 }
 0x1ad   : > { %v806_v50 = vpop.permute.xlu0 %805  ;;  %1644 = vmatprep.mubr.msk.f32.mxu1 %vm1131_vm2, %v1365_v56 }
 0x1ae   : > { %1075 = vrot.lane.b32.xlu1 %v3525_v23, %s1860_s8  ;;  %v1260_v17 = vsel %vm1230_vm5, %v1227_v20, %v806_v50  ;;  %v1363_v50 = vld [vmem:[%s3412_s1 + $0x8] sm:$0xff]  ;;  %v3537_v20 = vld [vmem:[#allocation44_spill] sm:$0xff] }
 0x1af   : > { %689 = vrot.lane.b32.xlu0 %v3029_v14, %s1856_s4  ;;  %v1293_v15 = vsel %vm1263_vm6, %v1260_v17, %v902_v12  ;;  %1643 = vmatprep.mubr.msk.f32.mxu0 %vm1131_vm2, %v1363_v50 }
 0x1b0   : > { %v998_v37 = vpop.permute.xlu1 %997 }
 0x1b1   : > { %v612_v9 = vpop.permute.xlu0 %611  ;;  %v1326_v16 = vsel %vm1296_vm7, %v1293_v15, %v998_v37 }
 0x1b2   : > { %881 = vrot.lane.b32.xlu1 %v3042_v53, %s1857_s5  ;;  %v1193_v60 = vsel %vm1164_vm3, %v1160_v47, %v612_v9  ;;  %v3203_v9 = vld [vmem:[%s1937_s28 + $0xd8] sm:$0xff] }
 0x1b3   : > { %785 = vrot.lane.b32.xlu0 %v3532_v31, %s1858_s6 }
 0x1b4   : > { %v1094_v23 = vpop.permute.xlu1 %1093 }
 0x1b5   : > { %v708_v27 = vpop.permute.xlu0 %707  ;;  %v1359_v54 = vsel %vm1329_vm8, %v1326_v16, %v1094_v23  ;;  %v1861_v16 = vmov 0  }
 0x1b6   : > { %977 = vrot.lane.b32.xlu1 %v2943_v24, %s1859_s7  ;;  %1485 = vmatpush2.xpose.msra.mxu0 %v1359_v54  ;;  %v1226_v0 = vsel %vm1197_vm4, %v1193_v60, %v708_v27  ;;  %v1366_v60 = vld [vmem:[%s3413_s2] sm:$0xff] }
 0x1b7   : > { %591 = vrot.lane.b32.xlu0 %v2551_v45, %s1855_s30  ;;  %1701 = vmatpush2.xpose.msra.mxu1 %v1359_v54 }
 0x1b8   : > { %v900_v43 = vpop.permute.xlu1 %899  ;;  %1630 = vmatprep.subr.msk.mxu0 %vm1131_vm2, %v2747_v21  ;;  %1670 = vmatprep.subr.msk.mxu1 %vm1131_vm2, %v2747_v21 }
 0x1b9   : > { %v804_v13 = vpop.permute.xlu0 %803  ;;  %1765 = vset.pattern.permute.xlu1 %v1861_v16  ;;  %1764 = vset.pattern.permute.xlu0 %v1861_v16 }
 0x1ba   : > { %1073 = vrot.lane.b32.xlu1 %v3527_v49, %s1860_s8  ;;  %v1259_v46 = vsel %vm1230_vm5, %v1226_v0, %v804_v13  ;;  %v1367_v13 = vld [vmem:[%s3413_s2 + $0x8] sm:$0xff]  ;;  %v3539_v0 = vld [vmem:[#allocation41_spill] sm:$0xff] }
 0x1bb   : > { %687 = vrot.lane.b32.xlu0 %v3063_v19, %s1856_s4  ;;  %v1292_v21 = vsel %vm1263_vm6, %v1259_v46, %v900_v43  ;;  %v1157_v46 = vsel %vm1131_vm2, %v2982_v2, %v3539_v0 }
 0x1bc   : > { %v996_v38 = vpop.permute.xlu1 %995 }
 0x1bd   : > { %v610_v42 = vpop.permute.xlu0 %609  ;;  %v1325_v34 = vsel %vm1296_vm7, %v1292_v21, %v996_v38 }
 0x1be   : > { %879 = vrot.lane.b32.xlu1 %v3074_v59, %s1857_s5  ;;  %v1192_v22 = vsel %vm1164_vm3, %v1159_v25, %v610_v42  ;;  %v3540_v25 = vld [vmem:[#allocation42_spill] sm:$0xff] }
 0x1bf   : > { %783 = vrot.lane.b32.xlu0 %v3534_v48, %s1858_s6 }
 0x1c0   : > { %v1092_v49 = vpop.permute.xlu1 %1091 }
 0x1c1   : > { %v706_v44 = vpop.permute.xlu0 %705  ;;  %v1358_v29 = vsel %vm1329_vm8, %v1325_v34, %v1092_v49 }
 0x1c2   : > { %975 = vrot.lane.b32.xlu1 %v2990_v18, %s1859_s7  ;;  %1487 = vmatpush2.xpose.msra.mxu0 %v1358_v29 }
 0x1c3   : > { %589 = vrot.lane.b32.xlu0 %v2292_v63, %s1855_s30  ;;  %1702 = vmatpush2.xpose.msra.mxu1 %v1358_v29  ;;  %v1225_v63 = vsel %vm1197_vm4, %v1192_v22, %v706_v44 }
 0x1c4   : > { %v898_v11 = vpop.permute.xlu1 %897  ;;  %1631 = vmatprep.subr.msk.mxu0 %vm1131_vm2, %v2679_v41  ;;  %1671 = vmatprep.subr.msk.mxu1 %vm1131_vm2, %v2679_v41 }
 0x1c5   : > { %v802_v3 = vpop.permute.xlu0 %801 }
 0x1c6   : > { %1071 = vrot.lane.b32.xlu1 %v3529_v40, %s1860_s8  ;;  %v1258_v7 = vsel %vm1230_vm5, %v1225_v63, %v802_v3  ;;  %v1156_v3 = vsel %vm1131_vm2, %v2905_v10, %v3540_v25  ;;  %v3544_v25 = vld [vmem:[#allocation38_spill] sm:$0xff] }
 0x1c7   : > { %685 = vrot.lane.b32.xlu0 %v3167_v55, %s1856_s4  ;;  %v1291_v4 = vsel %vm1263_vm6, %v1258_v7, %v898_v11 }
 0x1c8   : > { %v994_v41 = vpop.permute.xlu1 %993 }
 0x1c9   : > { %v608_v35 = vpop.permute.xlu0 %607  ;;  %v1324_v40 = vsel %vm1296_vm7, %v1291_v4, %v994_v41 }
 0x1ca   : > { %877 = vrot.lane.b32.xlu1 %v3530_v28, %s1857_s5 }
 0x1cb   : > { %781 = vrot.lane.b32.xlu0 %v3536_v33, %s1858_s6 }
 0x1cc   : > { %v1090_v12 = vpop.permute.xlu1 %1089 }
 0x1cd   : > { %v704_v8 = vpop.permute.xlu0 %703  ;;  %v1357_v32 = vsel %vm1329_vm8, %v1324_v40, %v1090_v12 }
 0x1ce   : > { %973 = vrot.lane.b32.xlu1 %v3029_v14, %s1859_s7  ;;  %1489 = vmatpush2.xpose.msra.mxu0 %v1357_v32 }
 0x1cf   : > { %587 = vrot.lane.b32.xlu0 %v2314_v26, %s1855_s30  ;;  %1703 = vmatpush2.xpose.msra.mxu1 %v1357_v32  ;;  %v1158_v26 = vsel %vm1131_vm2, %v2938_v5, %v3537_v20  ;;  %v3541_v32 = vld [vmem:[#allocation39_spill] sm:$0xff] }
 0x1d0   : > { %v896_v28 = vpop.permute.xlu1 %895  ;;  %1632 = vmatprep.subr.msk.mxu0 %vm1131_vm2, %v2728_v30  ;;  %1672 = vmatprep.subr.msk.mxu1 %vm1131_vm2, %v2728_v30  ;;  %v1191_v37 = vsel %vm1164_vm3, %v1158_v26, %v608_v35 }
 0x1d1   : > { %v800_v17 = vpop.permute.xlu0 %799  ;;  %v1224_v30 = vsel %vm1197_vm4, %v1191_v37, %v704_v8 }
 0x1d2   : > { %1069 = vrot.lane.b32.xlu1 %v3532_v31, %s1860_s8  ;;  %v1257_v15 = vsel %vm1230_vm5, %v1224_v30, %v800_v17  ;;  %v3538_v31 = vld [vmem:[#allocation6_spill] sm:$0xff] }
 0x1d3   : > { %683 = vrot.lane.b32.xlu0 %v3203_v9, %s1856_s4  ;;  %v1290_v27 = vsel %vm1263_vm6, %v1257_v15, %v896_v28  ;;  %v1155_v28 = vsel %vm1131_vm2, %v2943_v24, %v3541_v32  ;;  %s161_s4 = sand.u32 1, %s1844_s13  }
 0x1d4   : > { %v992_v5 = vpop.permute.xlu1 %991 }
 0x1d5   : > { %v606_v23 = vpop.permute.xlu0 %605  ;;  %v1323_v54 = vsel %vm1296_vm7, %v1290_v27, %v992_v5 }
 0x1d6   : > { %875 = vrot.lane.b32.xlu1 %v2551_v45, %s1857_s5  ;;  %v1190_v42 = vsel %vm1164_vm3, %v1157_v46, %v606_v23  ;;  %v3542_v23 = vld [vmem:[#allocation40_spill] sm:$0xff]  ;;  %s1609_s5 = sshll.u32 %s161_s4, 5 }
 0x1d7   : > { %779 = vrot.lane.b32.xlu0 %v3538_v31, %s1858_s6  ;;  %v1154_v27 = vsel %vm1131_vm2, %v2990_v18, %v3542_v23  ;;  %s163_s6 = scalar_lea.vmem [#allocation2], %s1609_s5 }
 0x1d8   : > { %v1088_v43 = vpop.permute.xlu1 %1087 }
 0x1d9   : > { %v702_v1 = vpop.permute.xlu0 %701  ;;  %v1356_v47 = vsel %vm1329_vm8, %v1323_v54, %v1088_v43 }
 0x1da   : > { %1491 = vmatpush2.xpose.msra.mxu0 %v1356_v47  ;;  %1704 = vmatpush2.xpose.msra.mxu1 %v1356_v47  ;;  %v1223_v21 = vsel %vm1197_vm4, %v1190_v42, %v702_v1 }
 0x1db   : > { %971 = vrot.lane.b32.xlu0 %v3063_v19, %s1859_s7  ;;  %1067 = vrot.lane.b32.xlu1 %v3534_v48, %s1860_s8  ;;  %s1543_s7 = sshll.u32 %s163_s6, 4  ;;  %s1650_s8 = sshll.u32 %s1905_s16, 9  ;;  %s3363_s7 = int_to_ptr.vmem [resolvable:$true] %s1543_s7 }
 0x1dc   : > { %v894_v45 = vpop.permute.xlu1 %893  ;;  %1633 = vmatprep.subr.msk.mxu0 %vm1131_vm2, %v2773_v52  ;;  %1673 = vmatprep.subr.msk.mxu1 %vm1131_vm2, %v2773_v52  ;;  %s3368_s11 = scalar_lea.hbm %s3414_s3, %s1650_s8  ;;  %s3370_s16 = scalar_lea.sflag [#allocation3], %s161_s4 }
 0x1dd   : > { %v798_v38 = vpop.permute.xlu0 %797  ;;  %s1792_s17 = scalar_lea.vmem %s3363_s7, 512  ;;  %p1799_p0 = scmp.lt.s32.totalorder %s3363_s7, %s1797_s20 }
 0x1de   : > { %v1256_v52 = vsel %vm1230_vm5, %v1223_v21, %v798_v38  ;;  %v3543_v38 = vld [vmem:[#allocation37_spill] sm:$0xff]  ;;  %p1793_p11 = scmp.ne.s32.totalorder %s3363_s7, %s1792_s17  ;;  %p1800_p1 = scmp.lt.s32.totalorder %s1798_s24, %s1792_s17 }
 0x1df   : > { %1375 = vperm.xlu1 %1765, %v1367_v13   ;;  %1370 = vperm.xlu0 %1764, %v1366_v60   ;;  %v1289_v49 = vsel %vm1263_vm6, %v1256_v52, %v894_v45  ;;  %v1153_v42 = vsel %vm1131_vm2, %v3029_v14, %v3543_v38 }
 0x1e0   : > { %v990_v48 = vpop.permute.xlu1 %989  ;;  %p1794_p12 = pnand %p1793_p11, %p1922_p5  ;;  %p1801_p2 = por %p1800_p1, %p1799_p0 }
 0x1e1   : > { %v604_v34 = vpop.permute.xlu0 %603  ;;  %v1322_v44 = vsel %vm1296_vm7, %v1289_v49, %v990_v48 }
 0x1e2   : > { %v1189_v63 = vsel %vm1164_vm3, %v1156_v3, %v604_v34  ;;  %v1152_v3 = vsel %vm1131_vm2, %v3063_v19, %v3544_v25  ;;  %p1795_p13 = pneg %p1794_p12 }
 0x1e4   : > { %v1086_v29 = vpop.permute.xlu1 %1085  ;;  %p1802_p3 = pnand %p1801_p2, %p1795_p13 }
 0x1e5   : > { %v700_v11 = vpop.permute.xlu0 %699  ;;  %v1355_v36 = vsel %vm1329_vm8, %v1322_v44, %v1086_v29 }
 0x1e6   : > { %1493 = vmatpush2.xpose.msra.mxu0 %v1355_v36  ;;  %1705 = vmatpush2.xpose.msra.mxu1 %v1355_v36  ;;  %v1222_v7 = vsel %vm1197_vm4, %v1189_v63, %v700_v11 }
 0x1e7   : > { %1634 = vmatprep.subr.msk.mxu0 %vm1131_vm2, %v2802_v62  ;;  %1674 = vmatprep.subr.msk.mxu1 %vm1131_vm2, %v2802_v62 }
 0x1e8   : > { %v892_v2 = vpop.permute.xlu1 %891 }
 0x1e9   : > { %v796_v22 = vpop.permute.xlu0 %795 }
 0x1ea   : > { %v1255_v41 = vsel %vm1230_vm5, %v1222_v7, %v796_v22 }
 0x1eb   : > { %v1288_v33 = vsel %vm1263_vm6, %v1255_v41, %v892_v2 }
 0x1ec   : > { %v988_v35 = vpop.permute.xlu1 %987 }
 0x1ed   : > { %v602_v4 = vpop.permute.xlu0 %601  ;;  %v1321_v40 = vsel %vm1296_vm7, %v1288_v33, %v988_v35 }
 0x1ee   : > { %v1188_v56 = vsel %vm1164_vm3, %v1155_v28, %v602_v4 }
 0x1f0   : > { %v1084_v12 = vpop.permute.xlu1 %1083 }
 0x1f1   : > { %v698_v62 = vpop.permute.xlu0 %697  ;;  %v1354_v8 = vsel %vm1329_vm8, %v1321_v40, %v1084_v12 }
 0x1f2   : > { %1495 = vmatpush2.xpose.msra.mxu0 %v1354_v8  ;;  %1706 = vmatpush2.xpose.msra.mxu1 %v1354_v8  ;;  %v1221_v20 = vsel %vm1197_vm4, %v1188_v56, %v698_v62  ;;  %v3545_v8 = vld [vmem:[#allocation35_spill] sm:$0xff] }
 0x1f3   : > { %1635 = vmatprep.subr.msk.mxu0 %vm1131_vm2, %v2832_v6  ;;  %1675 = vmatprep.subr.msk.mxu1 %vm1131_vm2, %v2832_v6 }
 0x1f4   : > { %v890_v10 = vpop.permute.xlu1 %889 }
 0x1f5   : > { %v794_v50 = vpop.permute.xlu0 %793 }
 0x1f6   : > { %v1254_v26 = vsel %vm1230_vm5, %v1221_v20, %v794_v50 }
 0x1f7   : > { %v1287_v30 = vsel %vm1263_vm6, %v1254_v26, %v890_v10  ;;  %v1151_v10 = vsel %vm1131_vm2, %v3167_v55, %v3545_v8 }
 0x1f8   : > { %v986_v17 = vpop.permute.xlu1 %985 }
 0x1f9   : > { %v600_v37 = vpop.permute.xlu0 %599  ;;  %v1320_v15 = vsel %vm1296_vm7, %v1287_v30, %v986_v17 }
 0x1fa   : > { %v1187_v54 = vsel %vm1164_vm3, %v1154_v27, %v600_v37 }
 0x1fc   : > { %v1082_v5 = vpop.permute.xlu1 %1081 }
 0x1fd   : > { %v696_v6 = vpop.permute.xlu0 %695  ;;  %v1353_v16 = vsel %vm1329_vm8, %v1320_v15, %v1082_v5  ;;  %v3546_v5 = vld [vmem:[#allocation36_spill] sm:$0xff] }
 0x1fe   : > { %1497 = vmatpush2.xpose.msra.mxu0 %v1353_v16  ;;  %1707 = vmatpush2.xpose.msra.mxu1 %v1353_v16  ;;  %v1220_v43 = vsel %vm1197_vm4, %v1187_v54, %v696_v6  ;;  %v1150_v6 = vsel %vm1131_vm2, %v3203_v9, %v3546_v5 }
 0x1ff   : > { %1636 = vmatprep.subr.msk.mxu0 %vm1131_vm2, %v2861_v51  ;;  %1676 = vmatprep.subr.msk.mxu1 %vm1131_vm2, %v2861_v51 }
 0x200   : > { %v888_v24 = vpop.permute.xlu1 %887 }
 0x201   : > { %v792_v31 = vpop.permute.xlu0 %791 }
 0x202   : > { %v1253_v1 = vsel %vm1230_vm5, %v1220_v43, %v792_v31 }
 0x203   : > { %v1286_v13 = vsel %vm1263_vm6, %v1253_v1, %v888_v24 }
 0x204   : > { %v984_v47 = vpop.permute.xlu1 %983 }
 0x205   : > { %v598_v45 = vpop.permute.xlu0 %597  ;;  %v1319_v60 = vsel %vm1296_vm7, %v1286_v13, %v984_v47  ;;  %v1790_v13 = vld [vmem:[%s1937_s28 + $0xc8] sm:$0xff] }
 0x206   : > { %v1186_v52 = vsel %vm1164_vm3, %v1153_v42, %v598_v45 }
 0x208   : > { %v1080_v0 = vpop.permute.xlu1 %1079 }
 0x209   : > { %v694_v51 = vpop.permute.xlu0 %693  ;;  %v1352_v46 = vsel %vm1329_vm8, %v1319_v60, %v1080_v0  ;;  %v3547_v60 = vld [vmem:[#allocation32_spill] sm:$0xff] }
 0x20a   : > { %1499 = vmatpush2.xpose.msra.mxu0 %v1352_v46  ;;  %1708 = vmatpush2.xpose.msra.mxu1 %v1352_v46  ;;  %v1219_v48 = vsel %vm1197_vm4, %v1186_v52, %v694_v51  ;;  %v1149_v0 = vsel %vm1131_vm2, %v1790_v13, %v3547_v60 }
 0x20b   : > { %1637 = vmatprep.subr.msk.mxu0 %vm1131_vm2, %v2891_v58  ;;  %1677 = vmatprep.subr.msk.mxu1 %vm1131_vm2, %v2891_v58 }
 0x20c   : > { %v886_v18 = vpop.permute.xlu1 %885 }
 0x20d   : > { %v790_v21 = vpop.permute.xlu0 %789 }
 0x20e   : > { %v1252_v34 = vsel %vm1230_vm5, %v1219_v48, %v790_v21 }
 0x20f   : > { %v1285_v29 = vsel %vm1263_vm6, %v1252_v34, %v886_v18 }
 0x210   : > { %v982_v49 = vpop.permute.xlu1 %981 }
 0x211   : > { %v596_v44 = vpop.permute.xlu0 %595  ;;  %v1318_v11 = vsel %vm1296_vm7, %v1285_v29, %v982_v49  ;;  %v3548_v29 = vld [vmem:[#allocation34_spill] sm:$0xff] }
 0x212   : > { %v1185_v63 = vsel %vm1164_vm3, %v1152_v3, %v596_v44  ;;  %v1791_v44 = vld [vmem:[%s1937_s28 + $0xc0] sm:$0xff] }
 0x214   : > { %v1078_v36 = vpop.permute.xlu1 %1077 }
 0x215   : > { %v692_v58 = vpop.permute.xlu0 %691  ;;  %v1351_v2 = vsel %vm1329_vm8, %v1318_v11, %v1078_v36  ;;  %v1148_v11 = vsel %vm1131_vm2, %v1791_v44, %v3548_v29 }
 0x216   : > { %1501 = vmatpush2.xpose.msra.mxu0 %v1351_v2  ;;  %1709 = vmatpush2.xpose.msra.mxu1 %v1351_v2  ;;  %v1218_v7 = vsel %vm1197_vm4, %v1185_v63, %v692_v58 }
 0x217   : > { %1638 = vmatprep.subr.msk.mxu0 %vm1131_vm2, %v2923_v57  ;;  %1678 = vmatprep.subr.msk.mxu1 %vm1131_vm2, %v2923_v57 }
 0x218   : > { %v884_v14 = vpop.permute.xlu1 %883 }
 0x219   : > { %v788_v22 = vpop.permute.xlu0 %787 }
 0x21a   : > { %v1251_v41 = vsel %vm1230_vm5, %v1218_v7, %v788_v22 }
 0x21b   : > { %v1284_v33 = vsel %vm1263_vm6, %v1251_v41, %v884_v14 }
 0x21c   : > { %v980_v35 = vpop.permute.xlu1 %979 }
 0x21d   : > { %v594_v4 = vpop.permute.xlu0 %593  ;;  %v1317_v40 = vsel %vm1296_vm7, %v1284_v33, %v980_v35  ;;  %v1364_v35 = vld [vmem:[%s3412_s1 + $0x10] sm:$0xff] }
 0x21e   : > { %v1184_v28 = vsel %vm1164_vm3, %v1151_v10, %v594_v4 }
 0x220   : > { %v1076_v12 = vpop.permute.xlu1 %1075 }
 0x221   : > { %v690_v57 = vpop.permute.xlu0 %689  ;;  %v1350_v62 = vsel %vm1329_vm8, %v1317_v40, %v1076_v12 }
 0x222   : > { %1503 = vmatpush2.xpose.msra.mxu0 %v1350_v62  ;;  %1710 = vmatpush2.xpose.msra.mxu1 %v1350_v62  ;;  %v1217_v50 = vsel %vm1197_vm4, %v1184_v28, %v690_v57 }
 0x223   : > { %1639 = vmatprep.subr.msk.mxu0 %vm1131_vm2, %v2961_v39  ;;  %1679 = vmatprep.subr.msk.mxu1 %vm1131_vm2, %v2961_v39 }
 0x224   : > { %v882_v19 = vpop.permute.xlu1 %881 }
 0x225   : > { %v786_v32 = vpop.permute.xlu0 %785 }
 0x226   : > { %v1250_v56 = vsel %vm1230_vm5, %v1217_v50, %v786_v32 }
 0x227   : > { %v1283_v17 = vsel %vm1263_vm6, %v1250_v56, %v882_v19 }
 0x228   : > { %v978_v20 = vpop.permute.xlu1 %977 }
 0x229   : > { %v592_v26 = vpop.permute.xlu0 %591  ;;  %v1316_v37 = vsel %vm1296_vm7, %v1283_v17, %v978_v20 }
 0x22a   : > { %v1183_v24 = vsel %vm1164_vm3, %v1150_v6, %v592_v26 }
 0x22c   : > { %v1074_v30 = vpop.permute.xlu1 %1073 }
 0x22d   : > { %v688_v39 = vpop.permute.xlu0 %687  ;;  %v1349_v15 = vsel %vm1329_vm8, %v1316_v37, %v1074_v30 }
 0x22e   : > { %1505 = vmatpush2.xpose.msra.mxu0 %v1349_v15  ;;  %1711 = vmatpush2.xpose.msra.mxu1 %v1349_v15  ;;  %v1216_v23 = vsel %vm1197_vm4, %v1183_v24, %v688_v39 }
 0x22f   : > { %1640 = vmatprep.subr.msk.mxu0 %vm1131_vm2, %v3002_v61  ;;  %1680 = vmatprep.subr.msk.mxu1 %vm1131_vm2, %v3002_v61 }
 0x230   : > { %v880_v55 = vpop.permute.xlu1 %879 }
 0x231   : > { %v784_v16 = vpop.permute.xlu0 %783 }
 0x232   : > { %v1249_v27 = vsel %vm1230_vm5, %v1216_v23, %v784_v16 }
 0x233   : > { %v1282_v43 = vsel %vm1263_vm6, %v1249_v27, %v880_v55 }
 0x234   : > { %v976_v31 = vpop.permute.xlu1 %975 }
 0x235   : > { %v590_v54 = vpop.permute.xlu0 %589  ;;  %v1315_v1 = vsel %vm1296_vm7, %v1282_v43, %v976_v31 }
 0x236   : > { %v1182_v46 = vsel %vm1164_vm3, %v1149_v0, %v590_v54 }
 0x238   : > { %v1072_v61 = vpop.permute.xlu1 %1071 }
 0x239   : > { %v686_v47 = vpop.permute.xlu0 %685  ;;  %v1348_v45 = vsel %vm1329_vm8, %v1315_v1, %v1072_v61 }
 0x23a   : > { %1507 = vmatpush2.xpose.msra.mxu0 %v1348_v45  ;;  %1712 = vmatpush2.xpose.msra.mxu1 %v1348_v45  ;;  %v1215_v18 = vsel %vm1197_vm4, %v1182_v46, %v686_v47 }
 0x23b   : > { %1641 = vmatprep.subr.msk.mxu0 %vm1131_vm2, %v3042_v53  ;;  %1681 = vmatprep.subr.msk.mxu1 %vm1131_vm2, %v3042_v53 }
 0x23c   : > { %v878_v9 = vpop.permute.xlu1 %877 }
 0x23d   : > { %v782_v51 = vpop.permute.xlu0 %781 }
 0x23e   : > { %v1248_v38 = vsel %vm1230_vm5, %v1215_v18, %v782_v51 }
 0x23f   : > { %v1281_v52 = vsel %vm1263_vm6, %v1248_v38, %v878_v9 }
 0x240   : > { %v974_v42 = vpop.permute.xlu1 %973 }
 0x241   : > { %v588_v21 = vpop.permute.xlu0 %587  ;;  %v1314_v48 = vsel %vm1296_vm7, %v1281_v52, %v974_v42 }
 0x242   : > { %v1181_v36 = vsel %vm1164_vm3, %v1148_v11, %v588_v21 }
 0x244   : > { %v1070_v53 = vpop.permute.xlu1 %1069 }
 0x245   : > { %v684_v34 = vpop.permute.xlu0 %683  ;;  %v1347_v49 = vsel %vm1329_vm8, %v1314_v48, %v1070_v53 }
 0x246   : > { %1509 = vmatpush2.xpose.msra.mxu0 %v1347_v49  ;;  %1713 = vmatpush2.xpose.msra.mxu1 %v1347_v49  ;;  %v1214_v2 = vsel %vm1197_vm4, %v1181_v36, %v684_v34 }
 0x247   : > { %1642 = vmatprep.subr.msk.mxu0 %vm1131_vm2, %v3074_v59  ;;  %1682 = vmatprep.subr.msk.mxu1 %vm1131_vm2, %v3074_v59  ;;  %v1362_v59 = vld [vmem:[%s3412_s1] sm:$0xff] }
 0x248   : > { %v876_v58 = vpop.permute.xlu1 %875 }
 0x249   : > { %v780_v14 = vpop.permute.xlu0 %779 }
 0x24a   : > { %v1247_v25 = vsel %vm1230_vm5, %v1214_v2, %v780_v14 }
 0x24b   : > { %v1280_v3 = vsel %vm1263_vm6, %v1247_v25, %v876_v58 }
 0x24d   : > { %v972_v22 = vpop.permute.xlu0 %971  ;;  %v1068_v63 = vpop.permute.xlu1 %1067 }
 0x24e   : > { %v1313_v7 = vsel %vm1296_vm7, %v1280_v3, %v972_v22 }
 0x24f   : > { %v1346_v41 = vsel %vm1329_vm8, %v1313_v7, %v1068_v63 }
 0x250   : > { %1511 = vmatpush2.xpose.msra.mxu0 %v1346_v41  ;;  %1714 = vmatpush2.xpose.msra.mxu1 %v1346_v41 }
 0x253   : > { %1513 = vmatmul.mubr.f32.vlgmr.msra.gmra.mxu0 %v1362_v59  ;;  %1519 = vmatmul.mubr.f32.vlgmr.msra.gmra.mxu1 %v1364_v35 }
 0x25a   : > { %v1376_v4 = vpop.permute.xlu1 %1375  ;;  %v1371_v33 = vpop.permute.xlu0 %1370 }
 0x313   : > { %v1514_v40 = vpop.f32.mrf.mxu0  ;;  %v1520_v12 = vpop.f32.mrf.mxu1 }
 0x314   : > { %v1521_v57 = vadd.f32 %v1520_v12, %v1376_v4  ;;  %v1515_v62 = vadd.f32 %v1514_v40, %v1371_v33 }
 0x315   : > { %v1516_v19 = vpop.f32.mrf.mxu0  ;;  %v1522_v8 = vpop.f32.mrf.mxu1 }
 0x316   : > { %1527 = vst [vmem:[%s163_s6 + $0x10] sm:$0xff] %v1521_v57  ;;  %1525 = vst [vmem:[%s163_s6] sm:$0xff] %v1515_v62  ;;  %v1517_v10 = vadd.f32 %v1516_v19, %v1371_v33  ;;  %v1523_v32 = vadd.f32 %v1522_v8, %v1376_v4 }
 0x318   : > { %1526 = vst [vmem:[%s163_s6 + $0x8] sm:$0xff] %v1517_v10  ;;  %1528 = vst [vmem:[%s163_s6 + $0x18] sm:$0xff] %v1523_v32 }
 0x319   : > { %1805 = shalt.err (!%p1802_p3)
}
 0x31a   : > { %s1806_s25 = scalar_lea.hbm %s3368_s11, 512  ;;  %s1810_s28 = scalar_lea.hbm %s3414_s3, 1024 }
 0x31b   : > { %p1807_p4 = scmp.ne.s32.totalorder %s3368_s11, %s1806_s25  ;;  %p1811_p9 = scmp.lt.s32.totalorder %s3368_s11, %s3414_s3 }
 0x31c   : > { %p1812_p10 = scmp.lt.s32.totalorder %s1810_s28, %s1806_s25 }
 0x31d   : > { %p1808_p7 = pnand %p1807_p4, %p1922_p5 }
 0x31e   : > { %p1813_p11 = por %p1812_p10, %p1811_p9 }
 0x31f   : > { %p1809_p8 = pneg %p1808_p7 }
 0x321   : > { %p1814_p12 = pnand %p1813_p11, %p1809_p8 }
 0x323   : > { %1817 = shalt.err (!%p1814_p12)
}
 0x324   : > { %s1863_s5 = smov 256  }
 0x325   : > { %1716 = dma.vmem_to_hbm [thread:$0]  (%p1922_p5), %s3363_s7, 512, %s3368_s11, %s3370_s16, %s1863_s5, %s1863_s5, %s1854_s29  }
 0x326 PF: > { %p1722_p13 = scmp.ge.s32.totalorder %s1852_s15, 2  ;;  %s1558_s6 = sand.u32 1, %s1840_s12  }
 0x327   : > { %s1559_s8 = scalar_lea.sflag [#allocation3], %s1558_s6 }
 0x328   : > { %p1719_p0 = pnand %p1722_p13, %p1926_p6 }
 0x32a   : > { %p1720_p1 = pneg %p1719_p0 }
 0x32c   : > { %1835 = dma.done.wait (%p1720_p1), %s1559_s8, 512  }
 0x32d   : > { %1837 = vsyncadd (%p1720_p1), %s1559_s8, 4294966784  ;;  %p13_p2 = scmp.ge.s32.totalorder %s1909_s18, 4   ;;  %s3549_s12 = smov %s1844_s13 }
 0x32e   : > { %s3550_s13 = smov %s1848_s14  ;;  %s3551_s14 = smov %s1920_s21 }
 0x32f   : > { %s3552_s15 = smov %s1909_s18  ;;  %15 = sbr.rel (!%p13_p2) target bundleno = 3 (0x3), region = 67 }
 0x334   :  { %1564 = vsyncpa [#allocation3], 1 }
 0x335   :  { %1566 = vsyncpa [#allocation3 + $0x1], 1 }

</bundles_post_ra>
